<compile_context>
chip_gen: v5e
topology: v5e:2x2
jax: 0.10.0
libtpu: 0.0.40
codegen_flags: <defaults>
</compile_context>

<pallas_src>
import functools

import jax
import jax.numpy as jnp
from jax import lax
from jax.experimental import pallas as pl
from jax.experimental.pallas import tpu as pltpu

EPS = 1e-5


# ---------------------------------------------------------------------------
# Fused Pallas kernel: conv1+BN1+ReLU -> conv2+BN2 -> (+shortcut) -> ReLU
# ---------------------------------------------------------------------------
def _make_fused_kernel(*, tap1_starts, tap2_starts, sc_start, has_sc_conv,
                       M, Wg, Wo, Ho, planes):
    """All geometry (tap offsets, sizes) is static and closed over."""
    stage_off = 2 * Wg          # out1[r, c] lives at flat (r+2)*Wg + c in o1p
    band = Wg - Wo              # per-row zero band: conv padding + garbage

    def kernel(*refs):
        if has_sc_conv:
            (x_ref, w1_ref, b1_ref, w2_ref, b2_ref,
             ws_ref, bs_ref, o_ref, o1p_ref) = refs
        else:
            (x_ref, w1_ref, b1_ref, w2_ref, b2_ref, o_ref, o1p_ref) = refs

        # conv1 (3x3, BN scale pre-folded): 9 shifted-slice matmuls straight
        # off the VMEM-resident padded input (no im2col); clean f32 MXU
        # accumulate chain (bias/ReLU only after the last tap).
        acc = jnp.dot(x_ref[0, pl.ds(tap1_starts[0], M), :], w1_ref[0],
                      preferred_element_type=jnp.float32)
        for t in range(1, 9):
            acc = acc + jnp.dot(x_ref[0, pl.ds(tap1_starts[t], M), :],
                                w1_ref[t], preferred_element_type=jnp.float32)
        out1 = jnp.maximum(acc + b1_ref[...], 0.0)

        # Stage out1 (unmasked, aligned start) into the conv2 scratch.  Only
        # the halo rows and the per-row padding/garbage band are zeroed — the
        # bulk of the slab is overwritten by the staging store anyway.
        o1p_ref[pl.ds(stage_off, M), :] = out1.astype(o1p_ref.dtype)
        zrow = jnp.zeros((2 * Wg, planes), o1p_ref.dtype)
        o1p_ref[pl.ds(0, 2 * Wg), :] = zrow                    # top halo
        o1p_ref[pl.ds((Ho + 2) * Wg, 2 * Wg), :] = zrow        # bottom halo
        zband = jnp.zeros((band, planes), o1p_ref.dtype)
        for r in range(Ho):                                    # padding band
            o1p_ref[pl.ds((r + 2) * Wg + Wo, band), :] = zband

        # conv2 (3x3 stride 1, BN scale pre-folded).
        acc2 = jnp.dot(o1p_ref[pl.ds(tap2_starts[0], M), :], w2_ref[0],
                       preferred_element_type=jnp.float32)
        for t in range(1, 9):
            acc2 = acc2 + jnp.dot(o1p_ref[pl.ds(tap2_starts[t], M), :],
                                  w2_ref[t], preferred_element_type=jnp.float32)
        acc2 = acc2 + b2_ref[...]

        # Shortcut: identity slice of the input slab, or fused 1x1 conv + BN.
        if has_sc_conv:
            sc = jnp.dot(x_ref[0, pl.ds(sc_start, M), :], ws_ref[...],
                         preferred_element_type=jnp.float32) + bs_ref[...]
        else:
            sc = x_ref[0, pl.ds(sc_start, M), :].astype(jnp.float32)

        res = jnp.maximum(acc2 + sc, 0.0)

        # Garbage-free NHWC output: one aligned (Wo, planes) slice per row —
        # no garbage columns ever reach HBM and no wrapper slice is needed.
        for r in range(Ho):
            o_ref[0, r] = res[r * Wg:r * Wg + Wo, :].astype(o_ref.dtype)

    return kernel


# ---------------------------------------------------------------------------
# BN folding + input slab preparation (layout plumbing)
# ---------------------------------------------------------------------------
def _fold_bn(w_oihw, gamma, beta, mean, var, compute_dtype):
    """Fold BN scale into conv weights; keep only the f32 bias for in-kernel add."""
    scale = gamma / jnp.sqrt(var + EPS)
    bias = (beta - mean * scale).reshape(1, -1).astype(jnp.float32)
    o, i, kh, kw = w_oihw.shape
    w = jnp.transpose(w_oihw, (2, 3, 1, 0)).reshape(kh * kw, i, o)
    w = (w * scale[None, None, :]).astype(compute_dtype)
    return w, bias


def _prepare_input_slab(x_nhwc, stride, Ho, Wg, R, compute_dtype):
    """1-pixel zero pad + stride-phase decomposition + flatten (one XLA pass)."""
    B, H, W, Cin = x_nhwc.shape
    s = stride
    xp = jnp.pad(x_nhwc, ((0, 0), (1, 1), (1, 1), (0, 0)))
    phase_list = []
    for a in range(s):
        for b in range(s):
            ph = xp[:, a::s, b::s, :]
            ph = jnp.pad(ph, ((0, 0), (0, Ho + 3 - ph.shape[1]),
                              (0, Wg - ph.shape[2]), (0, 0)))
            phase_list.append(ph.reshape(B, R, Cin))
    phases = (jnp.concatenate(phase_list, axis=1) if s > 1 else phase_list[0])
    return phases.astype(compute_dtype)


# ---------------------------------------------------------------------------
# Core NHWC forward (primary path — no layout transposes)
# ---------------------------------------------------------------------------
def _basic_block_nhwc(x_nhwc, params, stride, compute_dtype, out_dtype):
    B, H, W, Cin = x_nhwc.shape
    planes = params["conv1_w"].shape[0]
    s = int(stride)
    assert s in (1, 2), "BasicBlock only uses stride 1 or 2"
    if out_dtype is None:
        out_dtype = compute_dtype

    Ho = (H - 1) // s + 1
    Wo = (W - 1) // s + 1
    Wg = ((Wo + 2 + 7) // 8) * 8   # row pitch, sublane-aligned (>= Wo + 2)
    R = (Ho + 3) * Wg              # flattened rows per input phase
    M = Ho * Wg                    # rows of each conv GEMM (garbage cols incl)
    n_phase = s * s

    phases = _prepare_input_slab(x_nhwc, s, Ho, Wg, R, compute_dtype)

    w1, b1 = _fold_bn(params["conv1_w"], *params["bn1"], compute_dtype)
    w2, b2 = _fold_bn(params["conv2_w"], *params["bn2"], compute_dtype)

    # Static tap offsets.  Input slab: data of x[r, c] at flat (r+1)*Wg+(c+1)
    # of its phase.  conv2 scratch: data of out1[r, c] at flat (r+2)*Wg+c with
    # the left/right padding supplied by the zeroed band of the previous row.
    tap1 = tuple(((kh % s) * s + (kw % s)) * R + (kh // s) * Wg + (kw // s)
                 for kh in range(3) for kw in range(3))
    tap2 = tuple((kh + 1) * Wg + (kw - 1) for kh in range(3) for kw in range(3))
    a0 = 1 % s
    sc_start = (a0 * s + a0) * R + (1 // s) * (Wg + 1)

    has_sc_conv = (s != 1) or (Cin != planes)
    in_specs = [
        pl.BlockSpec((1, n_phase * R, Cin), lambda i: (i, 0, 0)),   # input
        pl.BlockSpec((9, Cin, planes), lambda i: (0, 0, 0)),        # w1 folded
        pl.BlockSpec((1, planes), lambda i: (0, 0)),                # b1
        pl.BlockSpec((9, planes, planes), lambda i: (0, 0, 0)),     # w2 folded
        pl.BlockSpec((1, planes), lambda i: (0, 0)),                # b2
    ]
    args = [phases, w1, b1, w2, b2]
    if has_sc_conv:
        ws, bs = _fold_bn(params["sc_w"], *params["sc_bn"], compute_dtype)
        args += [ws.reshape(Cin, planes), bs]
        in_specs += [pl.BlockSpec((Cin, planes), lambda i: (0, 0)),
                     pl.BlockSpec((1, planes), lambda i: (0, 0))]

    kernel = _make_fused_kernel(
        tap1_starts=tap1, tap2_starts=tap2, sc_start=sc_start,
        has_sc_conv=has_sc_conv, M=M, Wg=Wg, Wo=Wo, Ho=Ho, planes=planes)

    # Per-step VMEM footprint (double-buffered input slab + weights + scratch)
    # stays well under the 32 MiB scoped budget for ResNet-scale maps on
    # v5e/v6e/v7x; re-derive before adopting bigger/multi-image blocks on v7x.
    out = pl.pallas_call(
        kernel,
        out_shape=jax.ShapeDtypeStruct((B, Ho, Wo, planes), out_dtype),
        grid=(B,),
        in_specs=in_specs,
        out_specs=pl.BlockSpec((1, Ho, Wo, planes), lambda i: (i, 0, 0, 0)),
        scratch_shapes=[pltpu.VMEM(((Ho + 4) * Wg, planes), compute_dtype)],
        compiler_params=pltpu.CompilerParams(
            dimension_semantics=("parallel",),
            vmem_limit_bytes=32 * 1024 * 1024),
    )(*args)
    return out


@functools.partial(jax.jit,
                   static_argnames=("stride", "compute_dtype", "out_dtype"))
def basic_block_forward_nhwc(x_nhwc, params, stride,
                             compute_dtype=jnp.bfloat16, out_dtype=None):
    """Deployment path: NHWC in, NHWC out, no layout transposes."""
    return _basic_block_nhwc(x_nhwc, params, stride, compute_dtype, out_dtype)


@functools.partial(jax.jit,
                   static_argnames=("stride", "compute_dtype", "out_dtype"))
def basic_block_forward(x_nchw, params, stride,
                        compute_dtype=jnp.bfloat16, out_dtype=None):
    """PyTorch-interface parity wrapper (NCHW in / NCHW out)."""
    x = jnp.transpose(x_nchw, (0, 2, 3, 1))
    y = _basic_block_nhwc(x, params, stride, compute_dtype, out_dtype)
    return jnp.transpose(y, (0, 3, 1, 2))


# ---------------------------------------------------------------------------
# Pure-JAX reference (for verification)
# ---------------------------------------------------------------------------
def ref_forward(x, params, stride):
    def conv(x, w, s, p):
        return lax.conv_general_dilated(
            x, w, (s, s), ((p, p), (p, p)),
            dimension_numbers=("NCHW", "OIHW", "NCHW"))

    def bn(x, gamma, beta, mean, var):
        sh = (1, -1, 1, 1)
        return ((x - mean.reshape(sh)) / jnp.sqrt(var.reshape(sh) + EPS)
                * gamma.reshape(sh) + beta.reshape(sh))

    planes = params["conv1_w"].shape[0]
    out = jax.nn.relu(bn(conv(x, params["conv1_w"], stride, 1), *params["bn1"]))
    out = bn(conv(out, params["conv2_w"], 1, 1), *params["bn2"])
    if stride != 1 or x.shape[1] != planes:
        sc = bn(conv(x, params["sc_w"], stride, 0), *params["sc_bn"])
    else:
        sc = x
    return jax.nn.relu(out + sc)


# ---------------------------------------------------------------------------
# Deterministic parameter initialization
# ---------------------------------------------------------------------------
def init_params(key, in_planes, planes, stride):
    ks = jax.random.split(key, 4)

    def bn_params(c, shift):
        return (jnp.linspace(0.8, 1.2, c) + shift,          # gamma
                jnp.linspace(-0.1, 0.1, c) + shift,         # beta
                jnp.linspace(-0.05, 0.05, c) + shift,       # running_mean
                jnp.linspace(0.9, 1.1, c))                  # running_var

    params = {
        "conv1_w": 0.1 * jax.random.normal(ks[0], (planes, in_planes, 3, 3),
                                           jnp.float32),
        "bn1": bn_params(planes, 0.00),
        "conv2_w": 0.1 * jax.random.normal(ks[1], (planes, planes, 3, 3),
                                           jnp.float32),
        "bn2": bn_params(planes, 0.01),
    }
    if stride != 1 or in_planes != planes:
        params["sc_w"] = 0.1 * jax.random.normal(ks[2],
                                                 (planes, in_planes, 1, 1),
                                                 jnp.float32)
        params["sc_bn"] = bn_params(planes, 0.02)
    return params


if __name__ == "__main__":
    key = jax.random.PRNGKey(0)
    kx, kp1, kp2 = jax.random.split(key, 3)

    # Case 1: downsampling block (stride=2, 4 -> 8 channels -> conv shortcut)
    x1 = jax.random.normal(kx, (2, 4, 16, 16), jnp.float32)
    params1 = init_params(kp1, in_planes=4, planes=8, stride=2)
    ref1 = ref_forward(x1, params1, stride=2)

    out1_f32 = jax.block_until_ready(
        basic_block_forward(x1, params1, stride=2, compute_dtype=jnp.float32))
    assert out1_f32.shape == (2, 8, 8, 8)
    assert jnp.allclose(out1_f32, ref1, rtol=1e-4, atol=1e-4), \
        "downsample block mismatch (f32)"

    out1_bf16 = jax.block_until_ready(
        basic_block_forward(x1, params1, stride=2))   # bf16 compute + bf16 out
    assert jnp.allclose(out1_bf16.astype(jnp.float32), ref1,
                        rtol=5e-2, atol=5e-2), "downsample block mismatch (bf16)"

    # Case 2: identity block (stride=1, in_planes == planes -> identity shortcut)
    x2 = jax.random.normal(kx, (2, 8, 16, 16), jnp.float32)
    params2 = init_params(kp2, in_planes=8, planes=8, stride=1)
    ref2 = ref_forward(x2, params2, stride=1)

    out2_f32 = jax.block_until_ready(
        basic_block_forward(x2, params2, stride=1, compute_dtype=jnp.float32))
    assert out2_f32.shape == (2, 8, 16, 16)
    assert jnp.allclose(out2_f32, ref2, rtol=1e-4, atol=1e-4), \
        "identity block mismatch (f32)"

    out2_bf16 = jax.block_until_ready(
        basic_block_forward(x2, params2, stride=1))
    assert jnp.allclose(out2_bf16.astype(jnp.float32), ref2,
                        rtol=5e-2, atol=5e-2), "identity block mismatch (bf16)"

    # Also exercise the primary NHWC (transpose-free) entry point.
    x2_nhwc = jnp.transpose(x2, (0, 2, 3, 1))
    out2_nhwc = jax.block_until_ready(
        basic_block_forward_nhwc(x2_nhwc, params2, stride=1,
                                 compute_dtype=jnp.float32))
    assert jnp.allclose(jnp.transpose(out2_nhwc, (0, 3, 1, 2)), ref2,
                        rtol=1e-4, atol=1e-4), "NHWC path mismatch (f32)"

    print("KERNEL_OK")
</pallas_src>

<mosaic_0001>
module attributes {stable_mosaic.version = 11 : i64} {
  func.func @kernel(%arg0: i32, %arg1: memref<1x704x4xf32, #tpu.memory_space<vmem>>, %arg2: memref<9x4x8xf32, #tpu.memory_space<vmem>>, %arg3: memref<1x8xf32, #tpu.memory_space<vmem>>, %arg4: memref<9x8x8xf32, #tpu.memory_space<vmem>>, %arg5: memref<1x8xf32, #tpu.memory_space<vmem>>, %arg6: memref<4x8xf32, #tpu.memory_space<vmem>>, %arg7: memref<1x8xf32, #tpu.memory_space<vmem>>, %arg8: memref<1x8x8x8xf32, #tpu.memory_space<vmem>>, %arg9: memref<192x8xf32, #tpu.memory_space<vmem>>) attributes {dimension_semantics = [#tpu.dimension_semantics<parallel>], iteration_bounds = array<i64: 2>, scalar_prefetch = 0 : i64, scratch_operands = 1 : i64, tpu.core_type = #tpu.core_type<tc>, window_params = [{transform_indices = @transform_0, window_bounds = array<i64: 1, 704, 4>}, {pipeline_mode = #tpu.pipeline_mode<synchronous>, transform_indices = @transform_1, window_bounds = array<i64: 9, 4, 8>}, {pipeline_mode = #tpu.pipeline_mode<synchronous>, transform_indices = @transform_2, window_bounds = array<i64: 1, 8>}, {pipeline_mode = #tpu.pipeline_mode<synchronous>, transform_indices = @transform_3, window_bounds = array<i64: 9, 8, 8>}, {pipeline_mode = #tpu.pipeline_mode<synchronous>, transform_indices = @transform_4, window_bounds = array<i64: 1, 8>}, {pipeline_mode = #tpu.pipeline_mode<synchronous>, transform_indices = @transform_5, window_bounds = array<i64: 4, 8>}, {pipeline_mode = #tpu.pipeline_mode<synchronous>, transform_indices = @transform_6, window_bounds = array<i64: 1, 8>}, {transform_indices = @transform_7, window_bounds = array<i64: 1, 8, 8, 8>}]} {
    %c0 = arith.constant 0 : index
    %c0_0 = arith.constant 0 : index
    %c0_1 = arith.constant 0 : index
    %0 = vector.load %arg1[%c0, %c0_0, %c0_1] : memref<1x704x4xf32, #tpu.memory_space<vmem>>, vector<1x128x4xf32>
    %1 = vector.shape_cast %0 : vector<1x128x4xf32> to vector<128x4xf32>
    %c0_2 = arith.constant 0 : index
    %c0_3 = arith.constant 0 : index
    %c0_4 = arith.constant 0 : index
    %2 = vector.load %arg2[%c0_2, %c0_3, %c0_4] : memref<9x4x8xf32, #tpu.memory_space<vmem>>, vector<1x4x8xf32>
    %3 = vector.shape_cast %2 : vector<1x4x8xf32> to vector<4x8xf32>
    %cst = arith.constant dense<0.000000e+00> : vector<128x8xf32>
    %4 = tpu.matmul %1, %3, %cst {dimension_numbers = #tpu.dot_dimension_numbers<[1], [0], [0], [1], [0, 0, 1, 1], [], []>} : vector<128x4xf32>, vector<4x8xf32>, vector<128x8xf32> -> vector<128x8xf32>
    %c0_5 = arith.constant 0 : index
    %c176 = arith.constant 176 : index
    %c0_6 = arith.constant 0 : index
    %5 = vector.load %arg1[%c0_5, %c176, %c0_6] : memref<1x704x4xf32, #tpu.memory_space<vmem>>, vector<1x128x4xf32>
    %6 = vector.shape_cast %5 : vector<1x128x4xf32> to vector<128x4xf32>
    %c1 = arith.constant 1 : index
    %c0_7 = arith.constant 0 : index
    %c0_8 = arith.constant 0 : index
    %7 = vector.load %arg2[%c1, %c0_7, %c0_8] : memref<9x4x8xf32, #tpu.memory_space<vmem>>, vector<1x4x8xf32>
    %8 = vector.shape_cast %7 : vector<1x4x8xf32> to vector<4x8xf32>
    %cst_9 = arith.constant dense<0.000000e+00> : vector<128x8xf32>
    %9 = tpu.matmul %6, %8, %cst_9 {dimension_numbers = #tpu.dot_dimension_numbers<[1], [0], [0], [1], [0, 0, 1, 1], [], []>} : vector<128x4xf32>, vector<4x8xf32>, vector<128x8xf32> -> vector<128x8xf32>
    %10 = arith.addf %4, %9 : vector<128x8xf32>
    %c0_10 = arith.constant 0 : index
    %c1_11 = arith.constant 1 : index
    %c0_12 = arith.constant 0 : index
    %11 = vector.load %arg1[%c0_10, %c1_11, %c0_12] : memref<1x704x4xf32, #tpu.memory_space<vmem>>, vector<1x128x4xf32>
    %12 = vector.shape_cast %11 : vector<1x128x4xf32> to vector<128x4xf32>
    %c2 = arith.constant 2 : index
    %c0_13 = arith.constant 0 : index
    %c0_14 = arith.constant 0 : index
    %13 = vector.load %arg2[%c2, %c0_13, %c0_14] : memref<9x4x8xf32, #tpu.memory_space<vmem>>, vector<1x4x8xf32>
    %14 = vector.shape_cast %13 : vector<1x4x8xf32> to vector<4x8xf32>
    %cst_15 = arith.constant dense<0.000000e+00> : vector<128x8xf32>
    %15 = tpu.matmul %12, %14, %cst_15 {dimension_numbers = #tpu.dot_dimension_numbers<[1], [0], [0], [1], [0, 0, 1, 1], [], []>} : vector<128x4xf32>, vector<4x8xf32>, vector<128x8xf32> -> vector<128x8xf32>
    %16 = arith.addf %10, %15 : vector<128x8xf32>
    %c0_16 = arith.constant 0 : index
    %c352 = arith.constant 352 : index
    %c0_17 = arith.constant 0 : index
    %17 = vector.load %arg1[%c0_16, %c352, %c0_17] : memref<1x704x4xf32, #tpu.memory_space<vmem>>, vector<1x128x4xf32>
    %18 = vector.shape_cast %17 : vector<1x128x4xf32> to vector<128x4xf32>
    %c3 = arith.constant 3 : index
    %c0_18 = arith.constant 0 : index
    %c0_19 = arith.constant 0 : index
    %19 = vector.load %arg2[%c3, %c0_18, %c0_19] : memref<9x4x8xf32, #tpu.memory_space<vmem>>, vector<1x4x8xf32>
    %20 = vector.shape_cast %19 : vector<1x4x8xf32> to vector<4x8xf32>
    %cst_20 = arith.constant dense<0.000000e+00> : vector<128x8xf32>
    %21 = tpu.matmul %18, %20, %cst_20 {dimension_numbers = #tpu.dot_dimension_numbers<[1], [0], [0], [1], [0, 0, 1, 1], [], []>} : vector<128x4xf32>, vector<4x8xf32>, vector<128x8xf32> -> vector<128x8xf32>
    %22 = arith.addf %16, %21 : vector<128x8xf32>
    %c0_21 = arith.constant 0 : index
    %c528 = arith.constant 528 : index
    %c0_22 = arith.constant 0 : index
    %23 = vector.load %arg1[%c0_21, %c528, %c0_22] : memref<1x704x4xf32, #tpu.memory_space<vmem>>, vector<1x128x4xf32>
    %24 = vector.shape_cast %23 : vector<1x128x4xf32> to vector<128x4xf32>
    %c4 = arith.constant 4 : index
    %c0_23 = arith.constant 0 : index
    %c0_24 = arith.constant 0 : index
    %25 = vector.load %arg2[%c4, %c0_23, %c0_24] : memref<9x4x8xf32, #tpu.memory_space<vmem>>, vector<1x4x8xf32>
    %26 = vector.shape_cast %25 : vector<1x4x8xf32> to vector<4x8xf32>
    %cst_25 = arith.constant dense<0.000000e+00> : vector<128x8xf32>
    %27 = tpu.matmul %24, %26, %cst_25 {dimension_numbers = #tpu.dot_dimension_numbers<[1], [0], [0], [1], [0, 0, 1, 1], [], []>} : vector<128x4xf32>, vector<4x8xf32>, vector<128x8xf32> -> vector<128x8xf32>
    %28 = arith.addf %22, %27 : vector<128x8xf32>
    %c0_26 = arith.constant 0 : index
    %c353 = arith.constant 353 : index
    %c0_27 = arith.constant 0 : index
    %29 = vector.load %arg1[%c0_26, %c353, %c0_27] : memref<1x704x4xf32, #tpu.memory_space<vmem>>, vector<1x128x4xf32>
    %30 = vector.shape_cast %29 : vector<1x128x4xf32> to vector<128x4xf32>
    %c5 = arith.constant 5 : index
    %c0_28 = arith.constant 0 : index
    %c0_29 = arith.constant 0 : index
    %31 = vector.load %arg2[%c5, %c0_28, %c0_29] : memref<9x4x8xf32, #tpu.memory_space<vmem>>, vector<1x4x8xf32>
    %32 = vector.shape_cast %31 : vector<1x4x8xf32> to vector<4x8xf32>
    %cst_30 = arith.constant dense<0.000000e+00> : vector<128x8xf32>
    %33 = tpu.matmul %30, %32, %cst_30 {dimension_numbers = #tpu.dot_dimension_numbers<[1], [0], [0], [1], [0, 0, 1, 1], [], []>} : vector<128x4xf32>, vector<4x8xf32>, vector<128x8xf32> -> vector<128x8xf32>
    %34 = arith.addf %28, %33 : vector<128x8xf32>
    %c0_31 = arith.constant 0 : index
    %c16 = arith.constant 16 : index
    %c0_32 = arith.constant 0 : index
    %35 = vector.load %arg1[%c0_31, %c16, %c0_32] : memref<1x704x4xf32, #tpu.memory_space<vmem>>, vector<1x128x4xf32>
    %36 = vector.shape_cast %35 : vector<1x128x4xf32> to vector<128x4xf32>
    %c6 = arith.constant 6 : index
    %c0_33 = arith.constant 0 : index
    %c0_34 = arith.constant 0 : index
    %37 = vector.load %arg2[%c6, %c0_33, %c0_34] : memref<9x4x8xf32, #tpu.memory_space<vmem>>, vector<1x4x8xf32>
    %38 = vector.shape_cast %37 : vector<1x4x8xf32> to vector<4x8xf32>
    %cst_35 = arith.constant dense<0.000000e+00> : vector<128x8xf32>
    %39 = tpu.matmul %36, %38, %cst_35 {dimension_numbers = #tpu.dot_dimension_numbers<[1], [0], [0], [1], [0, 0, 1, 1], [], []>} : vector<128x4xf32>, vector<4x8xf32>, vector<128x8xf32> -> vector<128x8xf32>
    %40 = arith.addf %34, %39 : vector<128x8xf32>
    %c0_36 = arith.constant 0 : index
    %c192 = arith.constant 192 : index
    %c0_37 = arith.constant 0 : index
    %41 = vector.load %arg1[%c0_36, %c192, %c0_37] : memref<1x704x4xf32, #tpu.memory_space<vmem>>, vector<1x128x4xf32>
    %42 = vector.shape_cast %41 : vector<1x128x4xf32> to vector<128x4xf32>
    %c7 = arith.constant 7 : index
    %c0_38 = arith.constant 0 : index
    %c0_39 = arith.constant 0 : index
    %43 = vector.load %arg2[%c7, %c0_38, %c0_39] : memref<9x4x8xf32, #tpu.memory_space<vmem>>, vector<1x4x8xf32>
    %44 = vector.shape_cast %43 : vector<1x4x8xf32> to vector<4x8xf32>
    %cst_40 = arith.constant dense<0.000000e+00> : vector<128x8xf32>
    %45 = tpu.matmul %42, %44, %cst_40 {dimension_numbers = #tpu.dot_dimension_numbers<[1], [0], [0], [1], [0, 0, 1, 1], [], []>} : vector<128x4xf32>, vector<4x8xf32>, vector<128x8xf32> -> vector<128x8xf32>
    %46 = arith.addf %40, %45 : vector<128x8xf32>
    %c0_41 = arith.constant 0 : index
    %c17 = arith.constant 17 : index
    %c0_42 = arith.constant 0 : index
    %47 = vector.load %arg1[%c0_41, %c17, %c0_42] : memref<1x704x4xf32, #tpu.memory_space<vmem>>, vector<1x128x4xf32>
    %48 = vector.shape_cast %47 : vector<1x128x4xf32> to vector<128x4xf32>
    %c8 = arith.constant 8 : index
    %c0_43 = arith.constant 0 : index
    %c0_44 = arith.constant 0 : index
    %49 = vector.load %arg2[%c8, %c0_43, %c0_44] : memref<9x4x8xf32, #tpu.memory_space<vmem>>, vector<1x4x8xf32>
    %50 = vector.shape_cast %49 : vector<1x4x8xf32> to vector<4x8xf32>
    %cst_45 = arith.constant dense<0.000000e+00> : vector<128x8xf32>
    %51 = tpu.matmul %48, %50, %cst_45 {dimension_numbers = #tpu.dot_dimension_numbers<[1], [0], [0], [1], [0, 0, 1, 1], [], []>} : vector<128x4xf32>, vector<4x8xf32>, vector<128x8xf32> -> vector<128x8xf32>
    %52 = arith.addf %46, %51 : vector<128x8xf32>
    %c0_46 = arith.constant 0 : index
    %c0_47 = arith.constant 0 : index
    %53 = vector.load %arg3[%c0_46, %c0_47] : memref<1x8xf32, #tpu.memory_space<vmem>>, vector<1x8xf32>
    %54 = vector.broadcast %53 : vector<1x8xf32> to vector<128x8xf32>
    %55 = arith.addf %52, %54 : vector<128x8xf32>
    %cst_48 = arith.constant 0.000000e+00 : f32
    %56 = vector.broadcast %cst_48 : f32 to vector<128x8xf32>
    %57 = arith.maximumf %55, %56 : vector<128x8xf32>
    %c32 = arith.constant 32 : index
    %c0_49 = arith.constant 0 : index
    %58 = vector.load %arg9[%c32, %c0_49] : memref<192x8xf32, #tpu.memory_space<vmem>>, vector<128x8xf32>
    tpu.vector_store %arg9[%c32, %c0_49], %57 {strides = array<i32>} : memref<192x8xf32, #tpu.memory_space<vmem>>, vector<128x8xf32>,
    %cst_50 = arith.constant 0.000000e+00 : f32
    %59 = vector.broadcast %cst_50 : f32 to vector<32x8xf32>
    %c0_51 = arith.constant 0 : index
    %c0_52 = arith.constant 0 : index
    %60 = vector.load %arg9[%c0_51, %c0_52] : memref<192x8xf32, #tpu.memory_space<vmem>>, vector<32x8xf32>
    tpu.vector_store %arg9[%c0_51, %c0_52], %59 {strides = array<i32>} : memref<192x8xf32, #tpu.memory_space<vmem>>, vector<32x8xf32>,
    %c160 = arith.constant 160 : index
    %c0_53 = arith.constant 0 : index
    %61 = vector.load %arg9[%c160, %c0_53] : memref<192x8xf32, #tpu.memory_space<vmem>>, vector<32x8xf32>
    tpu.vector_store %arg9[%c160, %c0_53], %59 {strides = array<i32>} : memref<192x8xf32, #tpu.memory_space<vmem>>, vector<32x8xf32>,
    %cst_54 = arith.constant 0.000000e+00 : f32
    %62 = vector.broadcast %cst_54 : f32 to vector<8x8xf32>
    %c40 = arith.constant 40 : index
    %c0_55 = arith.constant 0 : index
    %63 = vector.load %arg9[%c40, %c0_55] : memref<192x8xf32, #tpu.memory_space<vmem>>, vector<8x8xf32>
    tpu.vector_store %arg9[%c40, %c0_55], %62 {strides = array<i32>} : memref<192x8xf32, #tpu.memory_space<vmem>>, vector<8x8xf32>,
    %c56 = arith.constant 56 : index
    %c0_56 = arith.constant 0 : index
    %64 = vector.load %arg9[%c56, %c0_56] : memref<192x8xf32, #tpu.memory_space<vmem>>, vector<8x8xf32>
    tpu.vector_store %arg9[%c56, %c0_56], %62 {strides = array<i32>} : memref<192x8xf32, #tpu.memory_space<vmem>>, vector<8x8xf32>,
    %c72 = arith.constant 72 : index
    %c0_57 = arith.constant 0 : index
    %65 = vector.load %arg9[%c72, %c0_57] : memref<192x8xf32, #tpu.memory_space<vmem>>, vector<8x8xf32>
    tpu.vector_store %arg9[%c72, %c0_57], %62 {strides = array<i32>} : memref<192x8xf32, #tpu.memory_space<vmem>>, vector<8x8xf32>,
    %c88 = arith.constant 88 : index
    %c0_58 = arith.constant 0 : index
    %66 = vector.load %arg9[%c88, %c0_58] : memref<192x8xf32, #tpu.memory_space<vmem>>, vector<8x8xf32>
    tpu.vector_store %arg9[%c88, %c0_58], %62 {strides = array<i32>} : memref<192x8xf32, #tpu.memory_space<vmem>>, vector<8x8xf32>,
    %c104 = arith.constant 104 : index
    %c0_59 = arith.constant 0 : index
    %67 = vector.load %arg9[%c104, %c0_59] : memref<192x8xf32, #tpu.memory_space<vmem>>, vector<8x8xf32>
    tpu.vector_store %arg9[%c104, %c0_59], %62 {strides = array<i32>} : memref<192x8xf32, #tpu.memory_space<vmem>>, vector<8x8xf32>,
    %c120 = arith.constant 120 : index
    %c0_60 = arith.constant 0 : index
    %68 = vector.load %arg9[%c120, %c0_60] : memref<192x8xf32, #tpu.memory_space<vmem>>, vector<8x8xf32>
    tpu.vector_store %arg9[%c120, %c0_60], %62 {strides = array<i32>} : memref<192x8xf32, #tpu.memory_space<vmem>>, vector<8x8xf32>,
    %c136 = arith.constant 136 : index
    %c0_61 = arith.constant 0 : index
    %69 = vector.load %arg9[%c136, %c0_61] : memref<192x8xf32, #tpu.memory_space<vmem>>, vector<8x8xf32>
    tpu.vector_store %arg9[%c136, %c0_61], %62 {strides = array<i32>} : memref<192x8xf32, #tpu.memory_space<vmem>>, vector<8x8xf32>,
    %c152 = arith.constant 152 : index
    %c0_62 = arith.constant 0 : index
    %70 = vector.load %arg9[%c152, %c0_62] : memref<192x8xf32, #tpu.memory_space<vmem>>, vector<8x8xf32>
    tpu.vector_store %arg9[%c152, %c0_62], %62 {strides = array<i32>} : memref<192x8xf32, #tpu.memory_space<vmem>>, vector<8x8xf32>,
    %c15 = arith.constant 15 : index
    %c0_63 = arith.constant 0 : index
    %71 = vector.load %arg9[%c15, %c0_63] : memref<192x8xf32, #tpu.memory_space<vmem>>, vector<128x8xf32>
    %c0_64 = arith.constant 0 : index
    %c0_65 = arith.constant 0 : index
    %c0_66 = arith.constant 0 : index
    %72 = vector.load %arg4[%c0_64, %c0_65, %c0_66] : memref<9x8x8xf32, #tpu.memory_space<vmem>>, vector<1x8x8xf32>
    %73 = vector.shape_cast %72 : vector<1x8x8xf32> to vector<8x8xf32>
    %cst_67 = arith.constant dense<0.000000e+00> : vector<128x8xf32>
    %74 = tpu.matmul %71, %73, %cst_67 {dimension_numbers = #tpu.dot_dimension_numbers<[1], [0], [0], [1], [0, 0, 1, 1], [], []>} : vector<128x8xf32>, vector<8x8xf32>, vector<128x8xf32> -> vector<128x8xf32>
    %c16_68 = arith.constant 16 : index
    %c0_69 = arith.constant 0 : index
    %75 = vector.load %arg9[%c16_68, %c0_69] : memref<192x8xf32, #tpu.memory_space<vmem>>, vector<128x8xf32>
    %c1_70 = arith.constant 1 : index
    %c0_71 = arith.constant 0 : index
    %c0_72 = arith.constant 0 : index
    %76 = vector.load %arg4[%c1_70, %c0_71, %c0_72] : memref<9x8x8xf32, #tpu.memory_space<vmem>>, vector<1x8x8xf32>
    %77 = vector.shape_cast %76 : vector<1x8x8xf32> to vector<8x8xf32>
    %cst_73 = arith.constant dense<0.000000e+00> : vector<128x8xf32>
    %78 = tpu.matmul %75, %77, %cst_73 {dimension_numbers = #tpu.dot_dimension_numbers<[1], [0], [0], [1], [0, 0, 1, 1], [], []>} : vector<128x8xf32>, vector<8x8xf32>, vector<128x8xf32> -> vector<128x8xf32>
    %79 = arith.addf %74, %78 : vector<128x8xf32>
    %c17_74 = arith.constant 17 : index
    %c0_75 = arith.constant 0 : index
    %80 = vector.load %arg9[%c17_74, %c0_75] : memref<192x8xf32, #tpu.memory_space<vmem>>, vector<128x8xf32>
    %c2_76 = arith.constant 2 : index
    %c0_77 = arith.constant 0 : index
    %c0_78 = arith.constant 0 : index
    %81 = vector.load %arg4[%c2_76, %c0_77, %c0_78] : memref<9x8x8xf32, #tpu.memory_space<vmem>>, vector<1x8x8xf32>
    %82 = vector.shape_cast %81 : vector<1x8x8xf32> to vector<8x8xf32>
    %cst_79 = arith.constant dense<0.000000e+00> : vector<128x8xf32>
    %83 = tpu.matmul %80, %82, %cst_79 {dimension_numbers = #tpu.dot_dimension_numbers<[1], [0], [0], [1], [0, 0, 1, 1], [], []>} : vector<128x8xf32>, vector<8x8xf32>, vector<128x8xf32> -> vector<128x8xf32>
    %84 = arith.addf %79, %83 : vector<128x8xf32>
    %c31 = arith.constant 31 : index
    %c0_80 = arith.constant 0 : index
    %85 = vector.load %arg9[%c31, %c0_80] : memref<192x8xf32, #tpu.memory_space<vmem>>, vector<128x8xf32>
    %c3_81 = arith.constant 3 : index
    %c0_82 = arith.constant 0 : index
    %c0_83 = arith.constant 0 : index
    %86 = vector.load %arg4[%c3_81, %c0_82, %c0_83] : memref<9x8x8xf32, #tpu.memory_space<vmem>>, vector<1x8x8xf32>
    %87 = vector.shape_cast %86 : vector<1x8x8xf32> to vector<8x8xf32>
    %cst_84 = arith.constant dense<0.000000e+00> : vector<128x8xf32>
    %88 = tpu.matmul %85, %87, %cst_84 {dimension_numbers = #tpu.dot_dimension_numbers<[1], [0], [0], [1], [0, 0, 1, 1], [], []>} : vector<128x8xf32>, vector<8x8xf32>, vector<128x8xf32> -> vector<128x8xf32>
    %89 = arith.addf %84, %88 : vector<128x8xf32>
    %c32_85 = arith.constant 32 : index
    %c0_86 = arith.constant 0 : index
    %90 = vector.load %arg9[%c32_85, %c0_86] : memref<192x8xf32, #tpu.memory_space<vmem>>, vector<128x8xf32>
    %c4_87 = arith.constant 4 : index
    %c0_88 = arith.constant 0 : index
    %c0_89 = arith.constant 0 : index
    %91 = vector.load %arg4[%c4_87, %c0_88, %c0_89] : memref<9x8x8xf32, #tpu.memory_space<vmem>>, vector<1x8x8xf32>
    %92 = vector.shape_cast %91 : vector<1x8x8xf32> to vector<8x8xf32>
    %cst_90 = arith.constant dense<0.000000e+00> : vector<128x8xf32>
    %93 = tpu.matmul %90, %92, %cst_90 {dimension_numbers = #tpu.dot_dimension_numbers<[1], [0], [0], [1], [0, 0, 1, 1], [], []>} : vector<128x8xf32>, vector<8x8xf32>, vector<128x8xf32> -> vector<128x8xf32>
    %94 = arith.addf %89, %93 : vector<128x8xf32>
    %c33 = arith.constant 33 : index
    %c0_91 = arith.constant 0 : index
    %95 = vector.load %arg9[%c33, %c0_91] : memref<192x8xf32, #tpu.memory_space<vmem>>, vector<128x8xf32>
    %c5_92 = arith.constant 5 : index
    %c0_93 = arith.constant 0 : index
    %c0_94 = arith.constant 0 : index
    %96 = vector.load %arg4[%c5_92, %c0_93, %c0_94] : memref<9x8x8xf32, #tpu.memory_space<vmem>>, vector<1x8x8xf32>
    %97 = vector.shape_cast %96 : vector<1x8x8xf32> to vector<8x8xf32>
    %cst_95 = arith.constant dense<0.000000e+00> : vector<128x8xf32>
    %98 = tpu.matmul %95, %97, %cst_95 {dimension_numbers = #tpu.dot_dimension_numbers<[1], [0], [0], [1], [0, 0, 1, 1], [], []>} : vector<128x8xf32>, vector<8x8xf32>, vector<128x8xf32> -> vector<128x8xf32>
    %99 = arith.addf %94, %98 : vector<128x8xf32>
    %c47 = arith.constant 47 : index
    %c0_96 = arith.constant 0 : index
    %100 = vector.load %arg9[%c47, %c0_96] : memref<192x8xf32, #tpu.memory_space<vmem>>, vector<128x8xf32>
    %c6_97 = arith.constant 6 : index
    %c0_98 = arith.constant 0 : index
    %c0_99 = arith.constant 0 : index
    %101 = vector.load %arg4[%c6_97, %c0_98, %c0_99] : memref<9x8x8xf32, #tpu.memory_space<vmem>>, vector<1x8x8xf32>
    %102 = vector.shape_cast %101 : vector<1x8x8xf32> to vector<8x8xf32>
    %cst_100 = arith.constant dense<0.000000e+00> : vector<128x8xf32>
    %103 = tpu.matmul %100, %102, %cst_100 {dimension_numbers = #tpu.dot_dimension_numbers<[1], [0], [0], [1], [0, 0, 1, 1], [], []>} : vector<128x8xf32>, vector<8x8xf32>, vector<128x8xf32> -> vector<128x8xf32>
    %104 = arith.addf %99, %103 : vector<128x8xf32>
    %c48 = arith.constant 48 : index
    %c0_101 = arith.constant 0 : index
    %105 = vector.load %arg9[%c48, %c0_101] : memref<192x8xf32, #tpu.memory_space<vmem>>, vector<128x8xf32>
    %c7_102 = arith.constant 7 : index
    %c0_103 = arith.constant 0 : index
    %c0_104 = arith.constant 0 : index
    %106 = vector.load %arg4[%c7_102, %c0_103, %c0_104] : memref<9x8x8xf32, #tpu.memory_space<vmem>>, vector<1x8x8xf32>
    %107 = vector.shape_cast %106 : vector<1x8x8xf32> to vector<8x8xf32>
    %cst_105 = arith.constant dense<0.000000e+00> : vector<128x8xf32>
    %108 = tpu.matmul %105, %107, %cst_105 {dimension_numbers = #tpu.dot_dimension_numbers<[1], [0], [0], [1], [0, 0, 1, 1], [], []>} : vector<128x8xf32>, vector<8x8xf32>, vector<128x8xf32> -> vector<128x8xf32>
    %109 = arith.addf %104, %108 : vector<128x8xf32>
    %c49 = arith.constant 49 : index
    %c0_106 = arith.constant 0 : index
    %110 = vector.load %arg9[%c49, %c0_106] : memref<192x8xf32, #tpu.memory_space<vmem>>, vector<128x8xf32>
    %c8_107 = arith.constant 8 : index
    %c0_108 = arith.constant 0 : index
    %c0_109 = arith.constant 0 : index
    %111 = vector.load %arg4[%c8_107, %c0_108, %c0_109] : memref<9x8x8xf32, #tpu.memory_space<vmem>>, vector<1x8x8xf32>
    %112 = vector.shape_cast %111 : vector<1x8x8xf32> to vector<8x8xf32>
    %cst_110 = arith.constant dense<0.000000e+00> : vector<128x8xf32>
    %113 = tpu.matmul %110, %112, %cst_110 {dimension_numbers = #tpu.dot_dimension_numbers<[1], [0], [0], [1], [0, 0, 1, 1], [], []>} : vector<128x8xf32>, vector<8x8xf32>, vector<128x8xf32> -> vector<128x8xf32>
    %114 = arith.addf %109, %113 : vector<128x8xf32>
    %c0_111 = arith.constant 0 : index
    %c0_112 = arith.constant 0 : index
    %115 = vector.load %arg5[%c0_111, %c0_112] : memref<1x8xf32, #tpu.memory_space<vmem>>, vector<1x8xf32>
    %116 = vector.broadcast %115 : vector<1x8xf32> to vector<128x8xf32>
    %117 = arith.addf %114, %116 : vector<128x8xf32>
    %c0_113 = arith.constant 0 : index
    %c528_114 = arith.constant 528 : index
    %c0_115 = arith.constant 0 : index
    %118 = vector.load %arg1[%c0_113, %c528_114, %c0_115] : memref<1x704x4xf32, #tpu.memory_space<vmem>>, vector<1x128x4xf32>
    %119 = vector.shape_cast %118 : vector<1x128x4xf32> to vector<128x4xf32>
    %c0_116 = arith.constant 0 : index
    %c0_117 = arith.constant 0 : index
    %120 = vector.load %arg6[%c0_116, %c0_117] : memref<4x8xf32, #tpu.memory_space<vmem>>, vector<4x8xf32>
    %cst_118 = arith.constant dense<0.000000e+00> : vector<128x8xf32>
    %121 = tpu.matmul %119, %120, %cst_118 {dimension_numbers = #tpu.dot_dimension_numbers<[1], [0], [0], [1], [0, 0, 1, 1], [], []>} : vector<128x4xf32>, vector<4x8xf32>, vector<128x8xf32> -> vector<128x8xf32>
    %c0_119 = arith.constant 0 : index
    %c0_120 = arith.constant 0 : index
    %122 = vector.load %arg7[%c0_119, %c0_120] : memref<1x8xf32, #tpu.memory_space<vmem>>, vector<1x8xf32>
    %123 = vector.broadcast %122 : vector<1x8xf32> to vector<128x8xf32>
    %124 = arith.addf %121, %123 : vector<128x8xf32>
    %125 = arith.addf %117, %124 : vector<128x8xf32>
    %cst_121 = arith.constant 0.000000e+00 : f32
    %126 = vector.broadcast %cst_121 : f32 to vector<128x8xf32>
    %127 = arith.maximumf %125, %126 : vector<128x8xf32>
    %128 = vector.extract_strided_slice %127 {offsets = [0, 0], sizes = [8, 8], strides = [1, 1]} : vector<128x8xf32> to vector<8x8xf32>
    %c0_122 = arith.constant 0 : index
    %c0_123 = arith.constant 0 : index
    %c0_124 = arith.constant 0 : index
    %c0_125 = arith.constant 0 : index
    %129 = vector.load %arg8[%c0_122, %c0_123, %c0_124, %c0_125] : memref<1x8x8x8xf32, #tpu.memory_space<vmem>>, vector<1x1x8x8xf32>
    %130 = vector.shape_cast %129 : vector<1x1x8x8xf32> to vector<8x8xf32>
    %131 = vector.shape_cast %128 : vector<8x8xf32> to vector<1x1x8x8xf32>
    tpu.vector_store %arg8[%c0_122, %c0_123, %c0_124, %c0_125], %131 {strides = array<i32>} : memref<1x8x8x8xf32, #tpu.memory_space<vmem>>, vector<1x1x8x8xf32>,
    %132 = vector.extract_strided_slice %127 {offsets = [16, 0], sizes = [8, 8], strides = [1, 1]} : vector<128x8xf32> to vector<8x8xf32>
    %c0_126 = arith.constant 0 : index
    %c1_127 = arith.constant 1 : index
    %c0_128 = arith.constant 0 : index
    %c0_129 = arith.constant 0 : index
    %133 = vector.load %arg8[%c0_126, %c1_127, %c0_128, %c0_129] : memref<1x8x8x8xf32, #tpu.memory_space<vmem>>, vector<1x1x8x8xf32>
    %134 = vector.shape_cast %133 : vector<1x1x8x8xf32> to vector<8x8xf32>
    %135 = vector.shape_cast %132 : vector<8x8xf32> to vector<1x1x8x8xf32>
    tpu.vector_store %arg8[%c0_126, %c1_127, %c0_128, %c0_129], %135 {strides = array<i32>} : memref<1x8x8x8xf32, #tpu.memory_space<vmem>>, vector<1x1x8x8xf32>,
    %136 = vector.extract_strided_slice %127 {offsets = [32, 0], sizes = [8, 8], strides = [1, 1]} : vector<128x8xf32> to vector<8x8xf32>
    %c0_130 = arith.constant 0 : index
    %c2_131 = arith.constant 2 : index
    %c0_132 = arith.constant 0 : index
    %c0_133 = arith.constant 0 : index
    %137 = vector.load %arg8[%c0_130, %c2_131, %c0_132, %c0_133] : memref<1x8x8x8xf32, #tpu.memory_space<vmem>>, vector<1x1x8x8xf32>
    %138 = vector.shape_cast %137 : vector<1x1x8x8xf32> to vector<8x8xf32>
    %139 = vector.shape_cast %136 : vector<8x8xf32> to vector<1x1x8x8xf32>
    tpu.vector_store %arg8[%c0_130, %c2_131, %c0_132, %c0_133], %139 {strides = array<i32>} : memref<1x8x8x8xf32, #tpu.memory_space<vmem>>, vector<1x1x8x8xf32>,
    %140 = vector.extract_strided_slice %127 {offsets = [48, 0], sizes = [8, 8], strides = [1, 1]} : vector<128x8xf32> to vector<8x8xf32>
    %c0_134 = arith.constant 0 : index
    %c3_135 = arith.constant 3 : index
    %c0_136 = arith.constant 0 : index
    %c0_137 = arith.constant 0 : index
    %141 = vector.load %arg8[%c0_134, %c3_135, %c0_136, %c0_137] : memref<1x8x8x8xf32, #tpu.memory_space<vmem>>, vector<1x1x8x8xf32>
    %142 = vector.shape_cast %141 : vector<1x1x8x8xf32> to vector<8x8xf32>
    %143 = vector.shape_cast %140 : vector<8x8xf32> to vector<1x1x8x8xf32>
    tpu.vector_store %arg8[%c0_134, %c3_135, %c0_136, %c0_137], %143 {strides = array<i32>} : memref<1x8x8x8xf32, #tpu.memory_space<vmem>>, vector<1x1x8x8xf32>,
    %144 = vector.extract_strided_slice %127 {offsets = [64, 0], sizes = [8, 8], strides = [1, 1]} : vector<128x8xf32> to vector<8x8xf32>
    %c0_138 = arith.constant 0 : index
    %c4_139 = arith.constant 4 : index
    %c0_140 = arith.constant 0 : index
    %c0_141 = arith.constant 0 : index
    %145 = vector.load %arg8[%c0_138, %c4_139, %c0_140, %c0_141] : memref<1x8x8x8xf32, #tpu.memory_space<vmem>>, vector<1x1x8x8xf32>
    %146 = vector.shape_cast %145 : vector<1x1x8x8xf32> to vector<8x8xf32>
    %147 = vector.shape_cast %144 : vector<8x8xf32> to vector<1x1x8x8xf32>
    tpu.vector_store %arg8[%c0_138, %c4_139, %c0_140, %c0_141], %147 {strides = array<i32>} : memref<1x8x8x8xf32, #tpu.memory_space<vmem>>, vector<1x1x8x8xf32>,
    %148 = vector.extract_strided_slice %127 {offsets = [80, 0], sizes = [8, 8], strides = [1, 1]} : vector<128x8xf32> to vector<8x8xf32>
    %c0_142 = arith.constant 0 : index
    %c5_143 = arith.constant 5 : index
    %c0_144 = arith.constant 0 : index
    %c0_145 = arith.constant 0 : index
    %149 = vector.load %arg8[%c0_142, %c5_143, %c0_144, %c0_145] : memref<1x8x8x8xf32, #tpu.memory_space<vmem>>, vector<1x1x8x8xf32>
    %150 = vector.shape_cast %149 : vector<1x1x8x8xf32> to vector<8x8xf32>
    %151 = vector.shape_cast %148 : vector<8x8xf32> to vector<1x1x8x8xf32>
    tpu.vector_store %arg8[%c0_142, %c5_143, %c0_144, %c0_145], %151 {strides = array<i32>} : memref<1x8x8x8xf32, #tpu.memory_space<vmem>>, vector<1x1x8x8xf32>,
    %152 = vector.extract_strided_slice %127 {offsets = [96, 0], sizes = [8, 8], strides = [1, 1]} : vector<128x8xf32> to vector<8x8xf32>
    %c0_146 = arith.constant 0 : index
    %c6_147 = arith.constant 6 : index
    %c0_148 = arith.constant 0 : index
    %c0_149 = arith.constant 0 : index
    %153 = vector.load %arg8[%c0_146, %c6_147, %c0_148, %c0_149] : memref<1x8x8x8xf32, #tpu.memory_space<vmem>>, vector<1x1x8x8xf32>
    %154 = vector.shape_cast %153 : vector<1x1x8x8xf32> to vector<8x8xf32>
    %155 = vector.shape_cast %152 : vector<8x8xf32> to vector<1x1x8x8xf32>
    tpu.vector_store %arg8[%c0_146, %c6_147, %c0_148, %c0_149], %155 {strides = array<i32>} : memref<1x8x8x8xf32, #tpu.memory_space<vmem>>, vector<1x1x8x8xf32>,
    %156 = vector.extract_strided_slice %127 {offsets = [112, 0], sizes = [8, 8], strides = [1, 1]} : vector<128x8xf32> to vector<8x8xf32>
    %c0_150 = arith.constant 0 : index
    %c7_151 = arith.constant 7 : index
    %c0_152 = arith.constant 0 : index
    %c0_153 = arith.constant 0 : index
    %157 = vector.load %arg8[%c0_150, %c7_151, %c0_152, %c0_153] : memref<1x8x8x8xf32, #tpu.memory_space<vmem>>, vector<1x1x8x8xf32>
    %158 = vector.shape_cast %157 : vector<1x1x8x8xf32> to vector<8x8xf32>
    %159 = vector.shape_cast %156 : vector<8x8xf32> to vector<1x1x8x8xf32>
    tpu.vector_store %arg8[%c0_150, %c7_151, %c0_152, %c0_153], %159 {strides = array<i32>} : memref<1x8x8x8xf32, #tpu.memory_space<vmem>>, vector<1x1x8x8xf32>,
    return
  }
  func.func @transform_0(%arg0: i32) -> (i32, i32, i32) {
    %c0_i32 = arith.constant 0 : i32
    %c0_i32_0 = arith.constant 0 : i32
    %c0_i32_1 = arith.constant 0 : i32
    return %arg0, %c0_i32, %c0_i32_0 : i32, i32, i32
  }
  func.func @transform_1(%arg0: i32) -> (i32, i32, i32) {
    %c0_i32 = arith.constant 0 : i32
    %c0_i32_0 = arith.constant 0 : i32
    %c0_i32_1 = arith.constant 0 : i32
    %c0_i32_2 = arith.constant 0 : i32
    return %c0_i32, %c0_i32_0, %c0_i32_1 : i32, i32, i32
  }
  func.func @transform_2(%arg0: i32) -> (i32, i32) {
    %c0_i32 = arith.constant 0 : i32
    %c0_i32_0 = arith.constant 0 : i32
    %c0_i32_1 = arith.constant 0 : i32
    return %c0_i32, %c0_i32_0 : i32, i32
  }
  func.func @transform_3(%arg0: i32) -> (i32, i32, i32) {
    %c0_i32 = arith.constant 0 : i32
    %c0_i32_0 = arith.constant 0 : i32
    %c0_i32_1 = arith.constant 0 : i32
    %c0_i32_2 = arith.constant 0 : i32
    return %c0_i32, %c0_i32_0, %c0_i32_1 : i32, i32, i32
  }
  func.func @transform_4(%arg0: i32) -> (i32, i32) {
    %c0_i32 = arith.constant 0 : i32
    %c0_i32_0 = arith.constant 0 : i32
    %c0_i32_1 = arith.constant 0 : i32
    return %c0_i32, %c0_i32_0 : i32, i32
  }
  func.func @transform_5(%arg0: i32) -> (i32, i32) {
    %c0_i32 = arith.constant 0 : i32
    %c0_i32_0 = arith.constant 0 : i32
    %c0_i32_1 = arith.constant 0 : i32
    return %c0_i32, %c0_i32_0 : i32, i32
  }
  func.func @transform_6(%arg0: i32) -> (i32, i32) {
    %c0_i32 = arith.constant 0 : i32
    %c0_i32_0 = arith.constant 0 : i32
    %c0_i32_1 = arith.constant 0 : i32
    return %c0_i32, %c0_i32_0 : i32, i32
  }
  func.func @transform_7(%arg0: i32) -> (i32, i32, i32, i32) {
    %c0_i32 = arith.constant 0 : i32
    %c0_i32_0 = arith.constant 0 : i32
    %c0_i32_1 = arith.constant 0 : i32
    %c0_i32_2 = arith.constant 0 : i32
    return %arg0, %c0_i32, %c0_i32_0, %c0_i32_1 : i32, i32, i32, i32
  }
}

</mosaic_0001>

<bundles_post_ra>
// kernel: basic_block_forward.1
= control target key start
LH: loop header
LB: loop body
LE: loop exit
PB: predicated region body
PF: predicated region fallthrough
CT: control target
= control target key end

     0   :  { %s3469_s24 = smov 0   ;;  %s4791_s0 = inlined_call_operand.vmem [shape: f32[2,704,4], index: 0, kind: input, shape index: {}]   ;;  %s4792_s1 = inlined_call_operand.vmem [shape: f32[9,4,8], index: 1, kind: input, shape index: {}]   ;;  %s4793_s2 = inlined_call_operand.vmem [shape: f32[1,8], index: 2, kind: input, shape index: {}]   ;;  %s4794_s3 = inlined_call_operand.vmem [shape: f32[9,8,8], index: 3, kind: input, shape index: {}]   ;;  %s4795_s4 = inlined_call_operand.vmem [shape: f32[1,8], index: 4, kind: input, shape index: {}]   ;;  %s4796_s5 = inlined_call_operand.vmem [shape: f32[4,8], index: 5, kind: input, shape index: {}]   ;;  %s4797_s6 = inlined_call_operand.vmem [shape: f32[1,8], index: 6, kind: input, shape index: {}]   ;;  %s4798_s7 = inlined_call_operand.vmem [shape: f32[2,8,8,8], index: 7, kind: output, shape index: {}]  }
   0x1 LB: > { %s3056_s25 = sadd.s32 4294967295, %s3426_s24   ;;  %p3060_p0 = scmp.ge.s32.totalorder %s3426_s24, 1  ;;  %s3426_s24 = sphi %s3469_s24, %s17_s24  }
   0x2   : > { %p237_p1 = scmp.lt.s32.totalorder %s3426_s24, 3 }
   0x4   : > { %p238_p2 = pnand %p3060_p0, %p237_p1 }
   0x6   : > { %241 = sbr.rel (%p238_p2) target bundleno = 884 (0x374), region = 48 }
   0xb   : > { %v3064_v0 = vld [vmem:[%s4792_s1 + $0x4] sm:$0xf]  ;;  %vm363_vm0 = vcmask 1043456   ;;  %p269_p3 = scmp.lt.s32.totalorder %s3056_s25, 1  ;;  %v295_v1 = vld [vmem:[%s4792_s1] sm:$0xf] }
   0xc   : > { %3404 = vmatpush.msk.msra.mxu3 %vm363_vm0, %v3064_v0  ;;  %v3099_v2 = vld [vmem:[%s4792_s1 + $0x8] sm:$0xf]  ;;  %3065 = vmatpush.msk.msra.mxu0 %vm363_vm0, %v3064_v0  ;;  %v3135_v3 = vld [vmem:[%s4792_s1 + $0x10] sm:$0xf]  ;;  %vm314_vm1 = vcmask 31744   ;;  %vm1634_vm2 = vcmask 64512  }
   0xd   : > { %s4809_s25 = smov (!%p269_p3, %s3056_s25), 1  ;;  %3100 = vmatpush.msk.msra.mxu2 %vm363_vm0, %v3099_v2  ;;  %3082 = vmatpush.msk.msra.mxu1 %vm363_vm0, %v295_v1  ;;  %v3117_v24 = vld [vmem:[%s4792_s1 + $0xc] sm:$0xf]  ;;  %v3189_v41 = vld [vmem:[%s4792_s1 + $0x1c] sm:$0xf] }
   0xe   : > { %3405 = vmatpush.msk.msrb.mxu3 %vm363_vm0, %v295_v1  ;;  %3136 = vmatpush.msk.msrb.mxu0 %vm363_vm0, %v3135_v3  ;;  %s3407_s11 = smul.u32 704, %s4809_s25  ;;  %v3171_v42 = vld [vmem:[%s4792_s1 + $0x18] sm:$0xf]  ;;  %v3207_v47 = vld [vmem:[%s4792_s1 + $0x20] sm:$0xf] }
   0xf   : > { %3172 = vmatpush.msk.msrb.mxu2 %vm363_vm0, %v3171_v42  ;;  %v3153_v48 = vld [vmem:[%s4792_s1 + $0x14] sm:$0xf] }
  0x10   : > { %s3501_s14 = scalar_lea.vmem %s4791_s0, %s3407_s11  ;;  %3154 = vmatpush.msk.msrb.mxu1 %vm363_vm0, %v3153_v48 }
  0x11   : > { %v3504_v4 = vld [vmem:[%s3501_s14 + $0x110] sm:$0xff]  ;;  %v548_v5 = vld [vmem:[%s3501_s14 + $0x1] sm:$0xff]  ;;  %v3516_v8 = vld [vmem:[%s3501_s14 + $0x118] sm:$0xff] }
  0x12   : > { %v296_v6 = vld [vmem:[%s3501_s14 + $0xb0] sm:$0xff]  ;;  %3078 = vmatmul.msk.f32.vlgmr.msra.gmra.mxu3 %vm314_vm1, %v3504_v4  ;;  %3101 = vmatmul.msk.f32.vlgmr.msra.gmra.mxu2 %vm314_vm1, %v548_v5  ;;  %v279_v7 = vld [vmem:[%s3501_s14] sm:$0xff]  ;;  %v297_v10 = vld [vmem:[%s3501_s14 + $0xb8] sm:$0xff] }
  0x13   : > { %3066 = vmatmul.msk.f32.vlgmr.msra.gmra.mxu0 %vm314_vm1, %v296_v6  ;;  %3083 = vmatmul.msk.f32.vlgmr.msra.gmra.mxu1 %vm314_vm1, %v279_v7  ;;  %v549_v9 = vld [vmem:[%s3501_s14 + $0x9] sm:$0xff]  ;;  %v3527_v12 = vld [vmem:[%s3501_s14 + $0x120] sm:$0xff]  ;;  %v3530_v13 = vld [vmem:[%s3501_s14 + $0x11] sm:$0xff] }
  0x14   : > { %3406 = vmatpush.msk.msra.mxu3 %vm363_vm0, %v3099_v2  ;;  %v280_v11 = vld [vmem:[%s3501_s14 + $0x8] sm:$0xff]  ;;  %v3533_v14 = vld [vmem:[%s3501_s14 + $0xc0] sm:$0xff]  ;;  %v3536_v15 = vld [vmem:[%s3501_s14 + $0x10] sm:$0xff]  ;;  %3208 = vmatpush.msk.msra.mxu0 %vm363_vm0, %v3207_v47 }
  0x15   : > { %v3547_v16 = vld [vmem:[%s3501_s14 + $0x128] sm:$0xff]  ;;  %v3550_v17 = vld [vmem:[%s3501_s14 + $0x19] sm:$0xff]  ;;  %v3573_v22 = vld [vmem:[%s3501_s14 + $0xd0] sm:$0xff] }
  0x16   : > { %v3553_v18 = vld [vmem:[%s3501_s14 + $0xc8] sm:$0xff]  ;;  %v3556_v19 = vld [vmem:[%s3501_s14 + $0x18] sm:$0xff]  ;;  %v3567_v20 = vld [vmem:[%s3501_s14 + $0x60] sm:$0xff] }
  0x17   : > { %v3570_v21 = vld [vmem:[%s3501_s14 + $0x21] sm:$0xff]  ;;  %v3594_v26 = vld [vmem:[%s3501_s14 + $0x29] sm:$0xff]  ;;  %v3597_v27 = vld [vmem:[%s3501_s14 + $0xd8] sm:$0xff] }
  0x18   : > { %v3576_v23 = vld [vmem:[%s3501_s14 + $0x20] sm:$0xff]  ;;  %v3591_v25 = vld [vmem:[%s3501_s14 + $0x68] sm:$0xff]  ;;  %v3611_v29 = vld [vmem:[%s3501_s14 + $0x70] sm:$0xff] }
  0x19   : > { %v3600_v28 = vld [vmem:[%s3501_s14 + $0x28] sm:$0xff]  ;;  %v3614_v30 = vld [vmem:[%s3501_s14 + $0x31] sm:$0xff]  ;;  %v3617_v31 = vld [vmem:[%s3501_s14 + $0xe0] sm:$0xff] }
  0x1a   : > { %3079 = vmatmul.msk.f32.gmra.mxu3 %vm314_vm1, %v3516_v8  ;;  %3102 = vmatmul.msk.f32.gmra.mxu2 %vm314_vm1, %v549_v9  ;;  %v3620_v32 = vld [vmem:[%s3501_s14 + $0x30] sm:$0xff]  ;;  %v3631_v33 = vld [vmem:[%s3501_s14 + $0x78] sm:$0xff]  ;;  %v3637_v35 = vld [vmem:[%s3501_s14 + $0xe8] sm:$0xff] }
  0x1b   : > { %3067 = vmatmul.msk.f32.gmra.mxu0 %vm314_vm1, %v297_v10  ;;  %3084 = vmatmul.msk.f32.gmra.mxu1 %vm314_vm1, %v280_v11  ;;  %v3634_v34 = vld [vmem:[%s3501_s14 + $0x39] sm:$0xff]  ;;  %v3651_v37 = vld [vmem:[%s3501_s14 + $0x61] sm:$0xff]  ;;  %v3657_v39 = vld [vmem:[%s3501_s14 + $0xf0] sm:$0xff] }
  0x1c   : > { %v3640_v36 = vld [vmem:[%s3501_s14 + $0x38] sm:$0xff]  ;;  %v3654_v38 = vld [vmem:[%s3501_s14 + $0x41] sm:$0xff]  ;;  %v3679_v43 = vld [vmem:[%s3501_s14 + $0x69] sm:$0xff] }
  0x1d   : > { %v3660_v40 = vld [vmem:[%s3501_s14 + $0x40] sm:$0xff]  ;;  %v3682_v44 = vld [vmem:[%s3501_s14 + $0x49] sm:$0xff]  ;;  %v3685_v45 = vld [vmem:[%s3501_s14 + $0xf8] sm:$0xff] }
  0x1e   : > { %v3688_v46 = vld [vmem:[%s3501_s14 + $0x48] sm:$0xff]  ;;  %v3707_v49 = vld [vmem:[%s3501_s14 + $0x71] sm:$0xff]  ;;  %v3713_v51 = vld [vmem:[%s3501_s14 + $0x100] sm:$0xff] }
  0x1f   : > { %v3710_v50 = vld [vmem:[%s3501_s14 + $0x51] sm:$0xff]  ;;  %v3727_v53 = vld [vmem:[%s3501_s14 + $0x79] sm:$0xff]  ;;  %v3733_v55 = vld [vmem:[%s3501_s14 + $0x108] sm:$0xff] }
  0x20   : > { %v3716_v52 = vld [vmem:[%s3501_s14 + $0x50] sm:$0xff]  ;;  %v3730_v54 = vld [vmem:[%s3501_s14 + $0x59] sm:$0xff]  ;;  %v998_v59 = vld [vmem:[%s3501_s14 + $0x161] sm:$0xff] }
  0x21   : > { %v3736_v56 = vld [vmem:[%s3501_s14 + $0x58] sm:$0xff]  ;;  %v698_v57 = vld [vmem:[%s3501_s14 + $0x160] sm:$0xff]  ;;  %v848_v58 = vld [vmem:[%s3501_s14 + $0x210] sm:$0xff] }
  0x22   : > { %3080 = vmatmul.msk.f32.gmra.mxu3 %vm314_vm1, %v3527_v12  ;;  %3103 = vmatmul.msk.f32.gmra.mxu2 %vm314_vm1, %v3530_v13  ;;  %v699_v60 = vld [vmem:[%s3501_s14 + $0x168] sm:$0xff]  ;;  %v849_v61 = vld [vmem:[%s3501_s14 + $0x218] sm:$0xff]  ;;  %v700_v63 = vld [vmem:[%s3501_s14 + $0x170] sm:$0xff] }
  0x23   : > { %3068 = vmatmul.msk.f32.gmra.mxu0 %vm314_vm1, %v3533_v14  ;;  %3085 = vmatmul.msk.f32.gmra.mxu1 %vm314_vm1, %v3536_v15  ;;  %v999_v62 = vld [vmem:[%s3501_s14 + $0x169] sm:$0xff]  ;;  %v850_v0 = vld [vmem:[%s3501_s14 + $0x220] sm:$0xff]  ;;  %v1000_v1 = vld [vmem:[%s3501_s14 + $0x171] sm:$0xff] }
  0x24   : > { %v701_v2 = vld [vmem:[%s3501_s14 + $0x178] sm:$0xff]  ;;  %v851_v3 = vld [vmem:[%s3501_s14 + $0x228] sm:$0xff]  ;;  %v702_v6 = vld [vmem:[%s3501_s14 + $0x180] sm:$0xff] }
  0x25   : > { %v1001_v5 = vld [vmem:[%s3501_s14 + $0x179] sm:$0xff]  ;;  %v852_v9 = vld [vmem:[%s3501_s14 + $0x230] sm:$0xff]  ;;  %v1002_v10 = vld [vmem:[%s3501_s14 + $0x181] sm:$0xff] }
  0x26   : > { %v854_v42 = vld [vmem:[%s3501_s14 + $0x240] sm:$0xff]  ;;  %v1004_v47 = vld [vmem:[%s3501_s14 + $0x191] sm:$0xff] }
  0x27   : > { %v705_v48 = vld [vmem:[%s3501_s14 + $0x198] sm:$0xff] }
  0x2a   : > { %3081 = vmatmul.msk.f32.gmra.mxu3 %vm314_vm1, %v3547_v16  ;;  %3104 = vmatmul.msk.f32.gmra.mxu2 %vm314_vm1, %v3550_v17 }
  0x2b   : > { %3069 = vmatmul.msk.f32.gmra.mxu0 %vm314_vm1, %v3553_v18  ;;  %3086 = vmatmul.msk.f32.gmra.mxu1 %vm314_vm1, %v3556_v19 }
  0x32   : > { %3095 = vmatmul.msk.f32.vlgmr.msrb.gmra.mxu3 %vm314_vm1, %v3567_v20  ;;  %3105 = vmatmul.msk.f32.gmra.mxu2 %vm314_vm1, %v3570_v21 }
  0x33   : > { %3070 = vmatmul.msk.f32.gmra.mxu0 %vm314_vm1, %v3573_v22  ;;  %3087 = vmatmul.msk.f32.gmra.mxu1 %vm314_vm1, %v3576_v23 }
  0x34   : > { %3118 = vmatpush.msk.msrb.mxu3 %vm363_vm0, %v3117_v24  ;;  %v1003_v24 = vld [vmem:[%s3501_s14 + $0x189] sm:$0xff] }
  0x3a   : > { %3096 = vmatmul.msk.f32.gmra.mxu3 %vm314_vm1, %v3591_v25  ;;  %3106 = vmatmul.msk.f32.gmra.mxu2 %vm314_vm1, %v3594_v26 }
  0x3b   : > { %3071 = vmatmul.msk.f32.gmra.mxu0 %vm314_vm1, %v3597_v27  ;;  %3088 = vmatmul.msk.f32.gmra.mxu1 %vm314_vm1, %v3600_v28 }
  0x42   : > { %3097 = vmatmul.msk.f32.gmra.mxu3 %vm314_vm1, %v3611_v29  ;;  %3107 = vmatmul.msk.f32.gmra.mxu2 %vm314_vm1, %v3614_v30 }
  0x43   : > { %3072 = vmatmul.msk.f32.gmra.mxu0 %vm314_vm1, %v3617_v31  ;;  %3089 = vmatmul.msk.f32.gmra.mxu1 %vm314_vm1, %v3620_v32 }
  0x4a   : > { %3098 = vmatmul.msk.f32.gmra.mxu3 %vm314_vm1, %v3631_v33  ;;  %3108 = vmatmul.msk.f32.gmra.mxu2 %vm314_vm1, %v3634_v34 }
  0x4b   : > { %3073 = vmatmul.msk.f32.gmra.mxu0 %vm314_vm1, %v3637_v35  ;;  %3090 = vmatmul.msk.f32.gmra.mxu1 %vm314_vm1, %v3640_v36 }
  0x52   : > { %3113 = vmatmul.msk.f32.vlgmr.msra.gmra.mxu3 %vm314_vm1, %v3651_v37  ;;  %3109 = vmatmul.msk.f32.gmra.mxu2 %vm314_vm1, %v3654_v38 }
  0x53   : > { %3074 = vmatmul.msk.f32.gmra.mxu0 %vm314_vm1, %v3657_v39  ;;  %3091 = vmatmul.msk.f32.gmra.mxu1 %vm314_vm1, %v3660_v40 }
  0x54   : > { %3190 = vmatpush.msk.msra.mxu3 %vm363_vm0, %v3189_v41 }
  0x5a   : > { %3114 = vmatmul.msk.f32.gmra.mxu3 %vm314_vm1, %v3679_v43  ;;  %3110 = vmatmul.msk.f32.gmra.mxu2 %vm314_vm1, %v3682_v44 }
  0x5b   : > { %3075 = vmatmul.msk.f32.gmra.mxu0 %vm314_vm1, %v3685_v45  ;;  %3092 = vmatmul.msk.f32.gmra.mxu1 %vm314_vm1, %v3688_v46 }
  0x62   : > { %3115 = vmatmul.msk.f32.gmra.mxu3 %vm314_vm1, %v3707_v49  ;;  %3111 = vmatmul.msk.f32.gmra.mxu2 %vm314_vm1, %v3710_v50 }
  0x63   : > { %3076 = vmatmul.msk.f32.gmra.mxu0 %vm314_vm1, %v3713_v51  ;;  %3093 = vmatmul.msk.f32.gmra.mxu1 %vm314_vm1, %v3716_v52 }
  0x6a   : > { %3116 = vmatmul.msk.f32.gmra.mxu3 %vm314_vm1, %v3727_v53  ;;  %3112 = vmatmul.msk.f32.gmra.mxu2 %vm314_vm1, %v3730_v54 }
  0x6b   : > { %3077 = vmatmul.msk.f32.gmra.mxu0 %vm314_vm1, %v3733_v55  ;;  %3094 = vmatmul.msk.f32.gmra.mxu1 %vm314_vm1, %v3736_v56 }
  0x72   : > { %3119 = vmatmul.msk.f32.vlgmr.msrb.gmra.mxu3 %vm314_vm1, %v698_v57  ;;  %3173 = vmatmul.msk.f32.vlgmr.msrb.gmra.mxu2 %vm314_vm1, %v3536_v15  ;;  %v703_v15 = vld [vmem:[%s3501_s14 + $0x188] sm:$0xff] }
  0x73   : > { %3137 = vmatmul.msk.f32.vlgmr.msrb.gmra.mxu0 %vm314_vm1, %v848_v58  ;;  %3155 = vmatmul.msk.f32.vlgmr.msrb.gmra.mxu1 %vm314_vm1, %v998_v59  ;;  %v855_v58 = vld [vmem:[%s3501_s14 + $0x248] sm:$0xff]  ;;  %v1005_v59 = vld [vmem:[%s3501_s14 + $0x199] sm:$0xff] }
  0x7a   : > { %3120 = vmatmul.msk.f32.gmra.mxu3 %vm314_vm1, %v699_v60  ;;  %3174 = vmatmul.msk.f32.gmra.mxu2 %vm314_vm1, %v3556_v19  ;;  %v706_v60 = vld [vmem:[%s3501_s14 + $0x1a0] sm:$0xff] }
  0x7b   : > { %3138 = vmatmul.msk.f32.gmra.mxu0 %vm314_vm1, %v849_v61  ;;  %3156 = vmatmul.msk.f32.gmra.mxu1 %vm314_vm1, %v999_v62  ;;  %v856_v62 = vld [vmem:[%s3501_s14 + $0x250] sm:$0xff] }
  0x82   : > { %3121 = vmatmul.msk.f32.gmra.mxu3 %vm314_vm1, %v700_v63  ;;  %3175 = vmatmul.msk.f32.gmra.mxu2 %vm314_vm1, %v3576_v23  ;;  %v853_v23 = vld [vmem:[%s3501_s14 + $0x238] sm:$0xff]  ;;  %v1006_v63 = vld [vmem:[%s3501_s14 + $0x1a1] sm:$0xff] }
  0x83   : > { %3139 = vmatmul.msk.f32.gmra.mxu0 %vm314_vm1, %v850_v0  ;;  %3157 = vmatmul.msk.f32.gmra.mxu1 %vm314_vm1, %v1000_v1  ;;  %v707_v1 = vld [vmem:[%s3501_s14 + $0x1a8] sm:$0xff] }
  0x8a   : > { %3122 = vmatmul.msk.f32.gmra.mxu3 %vm314_vm1, %v701_v2  ;;  %3176 = vmatmul.msk.f32.gmra.mxu2 %vm314_vm1, %v3600_v28 }
  0x8b   : > { %3140 = vmatmul.msk.f32.gmra.mxu0 %vm314_vm1, %v851_v3  ;;  %3158 = vmatmul.msk.f32.gmra.mxu1 %vm314_vm1, %v1001_v5  ;;  %v857_v3 = vld [vmem:[%s3501_s14 + $0x258] sm:$0xff]  ;;  %v1007_v5 = vld [vmem:[%s3501_s14 + $0x1a9] sm:$0xff] }
  0x90   : > { %v3779_v7 = vpop.f32.mrf.mxu0 }
  0x92   : > { %3123 = vmatmul.msk.f32.gmra.mxu3 %vm314_vm1, %v702_v6  ;;  %3177 = vmatmul.msk.f32.gmra.mxu2 %vm314_vm1, %v3620_v32  ;;  %v704_v32 = vld [vmem:[%s3501_s14 + $0x190] sm:$0xff] }
  0x93   : > { %3141 = vmatmul.msk.f32.gmra.mxu0 %vm314_vm1, %v852_v9  ;;  %3159 = vmatmul.msk.f32.gmra.mxu1 %vm314_vm1, %v1002_v10  ;;  %v708_v9 = vld [vmem:[%s3501_s14 + $0x1b0] sm:$0xff]  ;;  %v3839_v10 = vpop.f32.mrf.mxu1 }
  0x95   : > { %v420_v11 = vpop.f32.mrf.mxu3 }
  0x98   : > { %v3789_v19 = vpop.f32.mrf.mxu0 }
  0x9a   : > { %3124 = vmatmul.msk.f32.gmra.mxu3 %vm314_vm1, %v703_v15  ;;  %3178 = vmatmul.msk.f32.gmra.mxu2 %vm314_vm1, %v3640_v36  ;;  %v858_v15 = vld [vmem:[%s3501_s14 + $0x260] sm:$0xff] }
  0x9b   : > { %3142 = vmatmul.msk.f32.gmra.mxu0 %vm314_vm1, %v853_v23  ;;  %3160 = vmatmul.msk.f32.gmra.mxu1 %vm314_vm1, %v1003_v24  ;;  %v1008_v23 = vld [vmem:[%s3501_s14 + $0x1b1] sm:$0xff] }
  0x9d   : > { %v423_v28 = vpop.f32.mrf.mxu3 }
  0xa0   : > { %v3799_v41 = vpop.f32.mrf.mxu0 }
  0xa2   : > { %3125 = vmatmul.msk.f32.gmra.mxu3 %vm314_vm1, %v704_v32  ;;  %3179 = vmatmul.msk.f32.gmra.mxu2 %vm314_vm1, %v3660_v40  ;;  %v3851_v32 = vpop.f32.mrf.mxu2 }
  0xa3   : > { %3143 = vmatmul.msk.f32.gmra.mxu0 %vm314_vm1, %v854_v42  ;;  %3161 = vmatmul.msk.f32.gmra.mxu1 %vm314_vm1, %v1004_v47  ;;  %v859_v47 = vld [vmem:[%s3501_s14 + $0x268] sm:$0xff] }
  0xa5   : > { %v426_v36 = vpop.f32.mrf.mxu3 }
  0xa8   : > { %v3809_v57 = vpop.f32.mrf.mxu0 }
  0xaa   : > { %3126 = vmatmul.msk.f32.gmra.mxu3 %vm314_vm1, %v705_v48  ;;  %3180 = vmatmul.msk.f32.gmra.mxu2 %vm314_vm1, %v3688_v46  ;;  %v1009_v48 = vld [vmem:[%s3501_s14 + $0x1b9] sm:$0xff] }
  0xab   : > { %3144 = vmatmul.msk.f32.gmra.mxu0 %vm314_vm1, %v855_v58  ;;  %3162 = vmatmul.msk.f32.gmra.mxu1 %vm314_vm1, %v1005_v59  ;;  %v3857_v58 = vpop.f32.mrf.mxu1  ;;  %v710_v59 = vld [vmem:[%s3501_s14 + $0x1c0] sm:$0xff] }
  0xad   : > { %v429_v40 = vpop.f32.mrf.mxu3 }
  0xb0   : > { %v3819_v61 = vpop.f32.mrf.mxu0 }
  0xb2   : > { %3127 = vmatmul.msk.f32.gmra.mxu3 %vm314_vm1, %v706_v60  ;;  %3181 = vmatmul.msk.f32.gmra.mxu2 %vm314_vm1, %v3716_v52 }
  0xb3   : > { %3145 = vmatmul.msk.f32.gmra.mxu0 %vm314_vm1, %v856_v62  ;;  %3163 = vmatmul.msk.f32.gmra.mxu1 %vm314_vm1, %v1006_v63  ;;  %v860_v62 = vld [vmem:[%s3501_s14 + $0x270] sm:$0xff]  ;;  %v1010_v63 = vld [vmem:[%s3501_s14 + $0x1c1] sm:$0xff] }
  0xb5   : > { %v536_v46 = vpop.f32.mrf.mxu3 }
  0xb6   : > { %v537_v0 = vadd.f32 %v536_v46, %v420_v11  ;;  %v3869_v46 = vpop.f32.mrf.mxu2 }
  0xb8   : > { %v3829_v2 = vpop.f32.mrf.mxu0 }
  0xba   : > { %3128 = vmatmul.msk.f32.gmra.mxu3 %vm314_vm1, %v707_v1  ;;  %3182 = vmatmul.msk.f32.gmra.mxu2 %vm314_vm1, %v3736_v56 }
  0xbb   : > { %3146 = vmatmul.msk.f32.gmra.mxu0 %vm314_vm1, %v857_v3  ;;  %3164 = vmatmul.msk.f32.gmra.mxu1 %vm314_vm1, %v1007_v5  ;;  %v711_v3 = vld [vmem:[%s3501_s14 + $0x1c8] sm:$0xff] }
  0xbd   : > { %v539_v52 = vpop.f32.mrf.mxu3 }
  0xbe   : > { %v540_v6 = vadd.f32 %v539_v52, %v423_v28  ;;  %v709_v28 = vld [vmem:[%s3501_s14 + $0x1b8] sm:$0xff] }
  0xbf   : > { %v861_v52 = vld [vmem:[%s3501_s14 + $0x278] sm:$0xff] }
  0xc0   : > { %v3841_v11 = vpop.f32.mrf.mxu0 }
  0xc2   : > { %3129 = vmatmul.msk.f32.gmra.mxu3 %vm314_vm1, %v708_v9  ;;  %3183 = vmatmul.msk.f32.gmra.mxu2 %vm314_vm1, %v3567_v20  ;;  %v1011_v9 = vld [vmem:[%s3501_s14 + $0x1c9] sm:$0xff] }
  0xc3   : > { %3147 = vmatmul.msk.f32.gmra.mxu0 %vm314_vm1, %v858_v15  ;;  %3165 = vmatmul.msk.f32.gmra.mxu1 %vm314_vm1, %v1008_v23  ;;  %v3225_v15 = vld [vmem:[%s4794_s3 + $0x8] sm:$0xff] }
  0xc4   : > { %1765 = vmatpush.msra.mxu1 %v3225_v15  ;;  %v1013_v15 = vld [vmem:[%s3501_s14 + $0x1d9] sm:$0xff] }
  0xc5   : > { %v542_v56 = vpop.f32.mrf.mxu3 }
  0xc6   : > { %v543_v24 = vadd.f32 %v542_v56, %v426_v36 }
  0xc8   : > { %v3853_v42 = vpop.f32.mrf.mxu0 }
  0xca   : > { %3130 = vmatmul.msk.f32.gmra.mxu3 %vm314_vm1, %v709_v28  ;;  %3184 = vmatmul.msk.f32.gmra.mxu2 %vm314_vm1, %v3591_v25  ;;  %v506_v25 = vpop.f32.mrf.mxu1 }
  0xcb   : > { %3148 = vmatmul.msk.f32.gmra.mxu0 %vm314_vm1, %v859_v47  ;;  %3166 = vmatmul.msk.f32.gmra.mxu1 %vm314_vm1, %v1009_v48  ;;  %v712_v47 = vld [vmem:[%s3501_s14 + $0x1d0] sm:$0xff]  ;;  %v1162_v48 = vld [vmem:[%s3501_s14 + $0x80] sm:$0xff] }
  0xcd   : > { %v545_v20 = vpop.f32.mrf.mxu3 }
  0xce   : > { %v546_v36 = vadd.f32 %v545_v20, %v429_v40  ;;  %v862_v20 = vld [vmem:[%s3501_s14 + $0x280] sm:$0xff] }
  0xd0   : > { %v3865_v60 = vpop.f32.mrf.mxu0 }
  0xd2   : > { %3131 = vmatmul.msk.f32.gmra.mxu3 %vm314_vm1, %v710_v59  ;;  %3185 = vmatmul.msk.f32.gmra.mxu2 %vm314_vm1, %v3611_v29  ;;  %v1683_v29 = vld [vmem:[%s4794_s3] sm:$0xff]  ;;  %v509_v56 = vpop.f32.mrf.mxu1  ;;  %v1012_v59 = vld [vmem:[%s3501_s14 + $0x1d1] sm:$0xff] }
  0xd3   : > { %3149 = vmatmul.msk.f32.gmra.mxu0 %vm314_vm1, %v860_v62  ;;  %3167 = vmatmul.msk.f32.gmra.mxu1 %vm314_vm1, %v1010_v63 }
  0xd4   : > { %1870 = vmatpush.msra.mxu2 %v1683_v29  ;;  %v863_v29 = vld [vmem:[%s3501_s14 + $0x288] sm:$0xff] }
  0xd5   : > { %v670_v1 = vpop.f32.mrf.mxu3 }
  0xd6   : > { %v3876_v40 = vadd.f32 %v670_v1, %v537_v0  ;;  %v640_v0 = vpop.f32.mrf.mxu2  ;;  %v713_v1 = vld [vmem:[%s3501_s14 + $0x1d8] sm:$0xff] }
  0xd8   : > { %v3879_v5 = vpop.f32.mrf.mxu0 }
  0xda   : > { %3132 = vmatmul.msk.f32.gmra.mxu3 %vm314_vm1, %v711_v3  ;;  %3186 = vmatmul.msk.f32.gmra.mxu2 %vm314_vm1, %v3631_v33  ;;  %v1163_v3 = vld [vmem:[%s3501_s14 + $0x88] sm:$0xff] }
  0xdb   : > { %3150 = vmatmul.msk.f32.gmra.mxu0 %vm314_vm1, %v861_v52  ;;  %3168 = vmatmul.msk.f32.gmra.mxu1 %vm314_vm1, %v1011_v9  ;;  %v512_v52 = vpop.f32.mrf.mxu1 }
  0xdd   : > { %v673_v23 = vpop.f32.mrf.mxu3 }
  0xde   : > { %v3894_v28 = vadd.f32 %v673_v23, %v540_v6  ;;  %v643_v63 = vpop.f32.mrf.mxu2 }
  0xe0   : > { %v3898_v33 = vpop.f32.mrf.mxu0 }
  0xe2   : > { %3133 = vmatmul.msk.f32.gmra.mxu3 %vm314_vm1, %v712_v47  ;;  %3187 = vmatmul.msk.f32.gmra.mxu2 %vm314_vm1, %v1162_v48 }
  0xe3   : > { %3151 = vmatmul.msk.f32.gmra.mxu0 %vm314_vm1, %v862_v20  ;;  %3169 = vmatmul.msk.f32.gmra.mxu1 %vm314_vm1, %v1012_v59  ;;  %v515_v59 = vpop.f32.mrf.mxu1 }
  0xe5   : > { %v676_v62 = vpop.f32.mrf.mxu3 }
  0xe6   : > { %v3906_v6 = vadd.f32 %v676_v62, %v543_v24  ;;  %v501_v24 = vadd.f32 %v3839_v10, %v3779_v7  ;;  %v646_v48 = vpop.f32.mrf.mxu2 }
  0xe8   : > { %v3910_v9 = vpop.f32.mrf.mxu0  ;;  %v682_v62 = vadd.f32 %v3851_v32, %v501_v24 }
  0xea   : > { %3134 = vmatmul.msk.f32.gmra.mxu3 %vm314_vm1, %v713_v1  ;;  %3188 = vmatmul.msk.f32.gmra.mxu2 %vm314_vm1, %v1163_v3 }
  0xeb   : > { %3152 = vmatmul.msk.f32.gmra.mxu0 %vm314_vm1, %v863_v29  ;;  %3170 = vmatmul.msk.f32.gmra.mxu1 %vm314_vm1, %v1013_v15 }
  0xed   : > { %v679_v23 = vpop.f32.mrf.mxu3 }
  0xee   : > { %v3918_v47 = vadd.f32 %v679_v23, %v546_v36  ;;  %v504_v36 = vadd.f32 %v3857_v58, %v3789_v19  ;;  %v649_v7 = vpop.f32.mrf.mxu2  ;;  %v507_v23 = vadd.f32 %v506_v25, %v3799_v41 }
  0xf0   : > { %4801 = vst [vmem:[#allocation3_spill] sm:$0xff] %v3918_v47  ;;  %v934_v20 = vpop.f32.mrf.mxu0 }
  0xf2   : > { %3191 = vmatmul.msk.f32.vlgmr.msra.gmra.mxu3 %vm314_vm1, %v3533_v14  ;;  %v683_v14 = vadd.f32 %v3869_v46, %v504_v36  ;;  %v510_v46 = vadd.f32 %v509_v56, %v3809_v57 }
  0xf3   : > { %3209 = vmatmul.msk.f32.vlgmr.msra.gmra.mxu0 %vm314_vm1, %v3530_v13  ;;  %v518_v13 = vpop.f32.mrf.mxu1 }
  0xf5   : > { %v784_v1 = vpop.f32.mrf.mxu3 }
  0xf6   : > { %v832_v3 = vadd.f32 %v784_v1, %v682_v62  ;;  %v652_v58 = vpop.f32.mrf.mxu2 }
  0xf8   : > { %v3929_v29 = vadd.f32 %v934_v20, %v832_v3  ;;  %v937_v15 = vpop.f32.mrf.mxu0 }
  0xfa   : > { %3192 = vmatmul.msk.f32.gmra.mxu3 %vm314_vm1, %v3553_v18  ;;  %v684_v18 = vadd.f32 %v640_v0, %v507_v23  ;;  %v513_v0 = vadd.f32 %v512_v52, %v3819_v61 }
  0xfb   : > { %3210 = vmatmul.msk.f32.gmra.mxu0 %vm314_vm1, %v3550_v17  ;;  %v521_v17 = vpop.f32.mrf.mxu1 }
  0xfd   : > { %v787_v10 = vpop.f32.mrf.mxu3 }
  0xfe   : > { %v833_v32 = vadd.f32 %v787_v10, %v683_v14  ;;  %v655_v25 = vpop.f32.mrf.mxu2 }
 0x100   : > { %v3937_v24 = vadd.f32 %v937_v15, %v833_v32  ;;  %v940_v19 = vpop.f32.mrf.mxu0  ;;  %v519_v32 = vadd.f32 %v518_v13, %v3841_v11 }
 0x102   : > { %3193 = vmatmul.msk.f32.gmra.mxu3 %vm314_vm1, %v3573_v22  ;;  %v685_v22 = vadd.f32 %v643_v63, %v510_v46  ;;  %v516_v63 = vadd.f32 %v515_v59, %v3829_v2 }
 0x103   : > { %3211 = vmatmul.msk.f32.gmra.mxu0 %vm314_vm1, %v3570_v21  ;;  %v3951_v36 = vpop.f32.mrf.mxu1 }
 0x105   : > { %v790_v20 = vpop.f32.mrf.mxu3 }
 0x106   : > { %v834_v62 = vadd.f32 %v790_v20, %v684_v18  ;;  %v3960_v14 = vpop.f32.mrf.mxu2  ;;  %v522_v18 = vadd.f32 %v521_v17, %v3853_v42 }
 0x108   : > { %v3944_v1 = vadd.f32 %v940_v19, %v834_v62  ;;  %v943_v3 = vpop.f32.mrf.mxu0 }
 0x10a   : > { %3194 = vmatmul.msk.f32.gmra.mxu3 %vm314_vm1, %v3597_v27  ;;  %v686_v27 = vadd.f32 %v646_v48, %v513_v0 }
 0x10b   : > { %3212 = vmatmul.msk.f32.gmra.mxu0 %vm314_vm1, %v3594_v26  ;;  %v3964_v52 = vpop.f32.mrf.mxu1 }
 0x10d   : > { %v793_v41 = vpop.f32.mrf.mxu3 }
 0x10e   : > { %v835_v21 = vadd.f32 %v793_v41, %v685_v22  ;;  %v3973_v59 = vpop.f32.mrf.mxu2 }
 0x110   : > { %v3953_v15 = vadd.f32 %v943_v3, %v835_v21  ;;  %v946_v57 = vpop.f32.mrf.mxu0 }
 0x112   : > { %3195 = vmatmul.msk.f32.gmra.mxu3 %vm314_vm1, %v3617_v31  ;;  %v687_v31 = vadd.f32 %v649_v7, %v516_v63 }
 0x113   : > { %3213 = vmatmul.msk.f32.gmra.mxu0 %vm314_vm1, %v3614_v30  ;;  %v3979_v19 = vpop.f32.mrf.mxu1 }
 0x115   : > { %v796_v56 = vpop.f32.mrf.mxu3 }
 0x116   : > { %v836_v26 = vadd.f32 %v796_v56, %v686_v27  ;;  %v3988_v13 = vpop.f32.mrf.mxu2 }
 0x118   : > { %v3962_v10 = vadd.f32 %v946_v57, %v836_v26  ;;  %v949_v61 = vpop.f32.mrf.mxu0 }
 0x11a   : > { %3196 = vmatmul.msk.f32.gmra.mxu3 %vm314_vm1, %v3637_v35  ;;  %v688_v35 = vadd.f32 %v652_v58, %v519_v32  ;;  %v1312_v32 = vld [vmem:[%s3501_s14 + $0x130] sm:$0xff] }
 0x11b   : > { %3214 = vmatmul.msk.f32.gmra.mxu0 %vm314_vm1, %v3634_v34  ;;  %v3990_v58 = vpop.f32.mrf.mxu1 }
 0x11d   : > { %v799_v30 = vpop.f32.mrf.mxu3 }
 0x11e   : > { %v837_v48 = vadd.f32 %v799_v30, %v687_v31 }
 0x120   : > { %v3971_v23 = vadd.f32 %v949_v61, %v837_v48  ;;  %v952_v2 = vpop.f32.mrf.mxu0  ;;  %v3309_v48 = vld [vmem:[%s4794_s3 + $0x28] sm:$0xff] }
 0x121   : > { %2386 = vmatpush.msrb.mxu2 %v3309_v48 }
 0x122   : > { %3197 = vmatmul.msk.f32.gmra.mxu3 %vm314_vm1, %v3657_v39  ;;  %v689_v39 = vadd.f32 %v655_v25, %v522_v18  ;;  %v1313_v18 = vld [vmem:[%s3501_s14 + $0x138] sm:$0xff] }
 0x123   : > { %3215 = vmatmul.msk.f32.gmra.mxu0 %vm314_vm1, %v3654_v38  ;;  %v4004_v42 = vpop.f32.mrf.mxu1 }
 0x125   : > { %v802_v34 = vpop.f32.mrf.mxu3 }
 0x126   : > { %v838_v7 = vadd.f32 %v802_v34, %v688_v35  ;;  %v1462_v35 = vld [vmem:[%s3501_s14 + $0x81] sm:$0xff] }
 0x128   : > { %v3982_v20 = vadd.f32 %v952_v2, %v838_v7  ;;  %v955_v11 = vpop.f32.mrf.mxu0 }
 0x12a   : > { %3198 = vmatmul.msk.f32.gmra.mxu3 %vm314_vm1, %v3685_v45 }
 0x12b   : > { %3216 = vmatmul.msk.f32.gmra.mxu0 %vm314_vm1, %v3682_v44  ;;  %v4002_v44 = vpop.f32.mrf.mxu2  ;;  %v4016_v41 = vpop.f32.mrf.mxu1 }
 0x12d   : > { %v805_v38 = vpop.f32.mrf.mxu3 }
 0x12e   : > { %v839_v62 = vadd.f32 %v805_v38, %v689_v39  ;;  %v1463_v38 = vld [vmem:[%s3501_s14 + $0x89] sm:$0xff] }
 0x130   : > { %v3992_v46 = vadd.f32 %v955_v11, %v839_v62  ;;  %v3994_v3 = vpop.f32.mrf.mxu0 }
 0x132   : > { %3199 = vmatmul.msk.f32.gmra.mxu3 %vm314_vm1, %v3713_v51 }
 0x133   : > { %3217 = vmatmul.msk.f32.gmra.mxu0 %vm314_vm1, %v3710_v50  ;;  %v4014_v51 = vpop.f32.mrf.mxu2 }
 0x135   : > { %v4000_v45 = vpop.f32.mrf.mxu3 }
 0x138   : > { %v4006_v17 = vpop.f32.mrf.mxu0 }
 0x13a   : > { %3200 = vmatmul.msk.f32.gmra.mxu3 %vm314_vm1, %v3733_v55 }
 0x13b   : > { %3218 = vmatmul.msk.f32.gmra.mxu0 %vm314_vm1, %v3730_v54  ;;  %v4026_v55 = vpop.f32.mrf.mxu2  ;;  %v4030_v54 = vpop.f32.mrf.mxu1 }
 0x13d   : > { %v4012_v22 = vpop.f32.mrf.mxu3 }
 0x140   : > { %v4018_v50 = vpop.f32.mrf.mxu0 }
 0x142   : > { %3201 = vmatmul.msk.f32.gmra.mxu3 %vm314_vm1, %v3504_v4  ;;  %v4799_v4 = vmov 0.0  }
 0x143   : > { %3219 = vmatmul.msk.f32.gmra.mxu0 %vm314_vm1, %v3651_v37  ;;  %1653 = vst.msk [vmem:[#allocation2 + $0x10] sm:$0xff] %vm1634_vm2, %v4799_v4  ;;  %v4044_v57 = vpop.f32.mrf.mxu2 }
 0x144   : > { %1652 = vst.msk [vmem:[#allocation2 + $0x8] sm:$0xff] %vm1634_vm2, %v4799_v4 }
 0x145   : > { %v4024_v25 = vpop.f32.mrf.mxu3  ;;  %1654 = vst.msk [vmem:[#allocation2 + $0x18] sm:$0xff] %vm1634_vm2, %v4799_v4 }
 0x146   : > { %1655 = vst.msk [vmem:[#allocation2 + $0xa0] sm:$0xff] %vm1634_vm2, %v4799_v4 }
 0x147   : > { %1656 = vst.msk [vmem:[#allocation2 + $0xa8] sm:$0xff] %vm1634_vm2, %v4799_v4 }
 0x148   : > { %v4028_v21 = vpop.f32.mrf.mxu0  ;;  %1657 = vst.msk [vmem:[#allocation2 + $0xb0] sm:$0xff] %vm1634_vm2, %v4799_v4 }
 0x14a   : > { %3202 = vmatmul.msk.f32.gmra.mxu3 %vm314_vm1, %v3516_v8  ;;  %v3258_v8 = vld [vmem:[%s4794_s3 + $0x10] sm:$0xff] }
 0x14b   : > { %3220 = vmatmul.msk.f32.gmra.mxu0 %vm314_vm1, %v3679_v43  ;;  %1993 = vmatpush.msrb.mxu3 %v3258_v8  ;;  %v4057_v43 = vpop.f32.mrf.mxu1  ;;  %v1684_v27 = vld [vmem:[#allocation2 + $0x10] sm:$0xff]  ;;  %v4073_v26 = vpop.f32.mrf.mxu2 }
 0x14c   : > { %3226 = vmatmul.msk.f32.vlgmr.msra.gmra.mxu1 %vm1634_vm2, %v1684_v27  ;;  %v1685_v61 = vld [vmem:[#allocation2 + $0x18] sm:$0xff]  ;;  %v1132_v27 = vadd.f32 %v4004_v42, %v3929_v29 }
 0x14d   : > { %v4036_v0 = vpop.f32.mrf.mxu3  ;;  %v1668_v31 = vld [vmem:[#allocation2 + $0x17] sm:$0xff] }
 0x14e   : > { %v1912_v8 = vld [vmem:[#allocation2 + $0x11] sm:$0xff]  ;;  %v1282_v48 = vadd.f32 %v4014_v51, %v1132_v27 }
 0x150   : > { %v4040_v37 = vpop.f32.mrf.mxu0 }
 0x152   : > { %3203 = vmatmul.msk.f32.gmra.mxu3 %vm314_vm1, %v3527_v12 }
 0x153   : > { %3221 = vmatmul.msk.f32.gmra.mxu0 %vm314_vm1, %v3707_v49  ;;  %v1667_v49 = vld [vmem:[#allocation2 + $0xf] sm:$0xff]  ;;  %v4077_v30 = vpop.f32.mrf.mxu1  ;;  %v4098_v7 = vpop.f32.mrf.mxu2 }
 0x154   : > { %3242 = vmatmul.msk.f32.vlgmr.msra.gmra.mxu2 %vm1634_vm2, %v1667_v49  ;;  %3227 = vmatmul.msk.f32.gmra.mxu1 %vm1634_vm2, %v1685_v61 }
 0x155   : > { %v4061_v12 = vpop.f32.mrf.mxu3 }
 0x158   : > { %v4066_v56 = vpop.f32.mrf.mxu0 }
 0x15a   : > { %3204 = vmatmul.msk.f32.gmra.mxu3 %vm314_vm1, %v3547_v16  ;;  %v3275_v16 = vld [vmem:[%s4794_s3 + $0x18] sm:$0xff] }
 0x15b   : > { %3222 = vmatmul.msk.f32.gmra.mxu0 %vm314_vm1, %v3727_v53  ;;  %v3292_v53 = vld [vmem:[%s4794_s3 + $0x20] sm:$0xff]  ;;  %v4101_v11 = vpop.f32.mrf.mxu1  ;;  %v4112_v49 = vpop.f32.mrf.mxu2 }
 0x15c   : > { %2124 = vmatpush.msrb.mxu0 %v3275_v16  ;;  %2255 = vmatpush.msrb.mxu1 %v3292_v53 }
 0x15d   : > { %v4075_v63 = vpop.f32.mrf.mxu3  ;;  %3243 = vmatmul.msk.f32.gmra.mxu2 %vm1634_vm2, %v1668_v31 }
 0x160   : > { %v4089_v2 = vpop.f32.mrf.mxu0 }
 0x162   : > { %3205 = vmatmul.msk.f32.gmra.mxu3 %vm314_vm1, %v1312_v32  ;;  %v4121_v32 = vld [vmem:[%s4793_s2] ss:$0 sm:$0xff] }
 0x163   : > { %3223 = vmatmul.msk.f32.gmra.mxu0 %vm314_vm1, %v1462_v35  ;;  %v4114_v31 = vpop.f32.mrf.mxu1  ;;  %v1133_v35 = vadd.f32 %v4016_v41, %v3937_v24 }
 0x165   : > { %v4096_v34 = vpop.f32.mrf.mxu3 }
 0x168   : > { %v4103_v39 = vpop.f32.mrf.mxu0 }
 0x169   : > { %4802 = vst [vmem:[#allocation4_spill] sm:$0xff] %v4103_v39 }
 0x16a   : > { %3206 = vmatmul.msk.f32.gmra.mxu3 %vm314_vm1, %v1313_v18  ;;  %v4125_v18 = vpop.f32.mrf.mxu2 }
 0x16b   : > { %3224 = vmatmul.msk.f32.gmra.mxu0 %vm314_vm1, %v1463_v38  ;;  %v4129_v4 = vpop.f32.mrf.mxu1 }
 0x16d   : > { %v4108_v62 = vpop.f32.mrf.mxu3 }
 0x16e   : > { %4803 = vst [vmem:[#allocation5_spill] sm:$0xff] %v4108_v62 }
 0x170   : > { %v1534_v61 = vpop.f32.mrf.mxu0 }
 0x172   : > { %3259 = vmatmul.msk.f32.vlgmr.msrb.gmra.mxu3 %vm1634_vm2, %v1912_v8  ;;  %v1283_v8 = vadd.f32 %v4026_v55, %v1133_v35 }
 0x173   : > { %v4140_v47 = vpop.f32.mrf.mxu1 }
 0x175   : > { %v1384_v16 = vpop.f32.mrf.mxu3 }
 0x176   : > { %v1432_v53 = vadd.f32 %v1384_v16, %v1282_v48  ;;  %v1134_v16 = vadd.f32 %v4030_v54, %v3944_v1  ;;  %v4804_v1 = vmov 0.0   ;;  %v1135_v54 = vadd.f32 %v4057_v43, %v3953_v15 }
 0x177   : > { %v1136_v15 = vadd.f32 %v4077_v30, %v3962_v10 }
 0x178   : > { %v1582_v29 = vadd.f32 %v1534_v61, %v1432_v53  ;;  %v1537_v42 = vpop.f32.mrf.mxu0  ;;  %v1284_v61 = vadd.f32 %v4044_v57, %v1134_v16  ;;  %v4136_v53 = vpop.f32.mrf.mxu2 }
 0x17a   : > { %v1602_v38 = vadd.f32 %v4121_v32, %v1582_v29 }
 0x17b   : > { %v4166_v43 = vpop.f32.mrf.mxu1 }
 0x17c   : > { %v1618_v51 = vmax.f32 %v1602_v38, 0.0 }
 0x17d   : > { %v1387_v27 = vpop.f32.mrf.mxu3 }
 0x17e   : > { %1635 = vst.msk [vmem:[#allocation2 + $0x20] sm:$0xff] %vm1634_vm2, %v1618_v51  ;;  %v1433_v48 = vadd.f32 %v1387_v27, %v1283_v8  ;;  %v1285_v51 = vadd.f32 %v4073_v26, %v1135_v54 }
 0x180   : > { %v1583_v39 = vadd.f32 %v1537_v42, %v1433_v48  ;;  %v1540_v24 = vpop.f32.mrf.mxu0  ;;  %v4154_v16 = vpop.f32.mrf.mxu2 }
 0x182   : > { %v1603_v41 = vadd.f32 %v4121_v32, %v1583_v39 }
 0x184   : > { %v1619_v29 = vmax.f32 %v1603_v41, 0.0 }
 0x185   : > { %v1390_v55 = vpop.f32.mrf.mxu3  ;;  %v4138_v35 = vld [vmem:[#allocation2 + $0x20] sm:$0xff] }
 0x186   : > { %v1669_v38 = vld [vmem:[#allocation2 + $0x1f] sm:$0xff]  ;;  %1636 = vst.msk [vmem:[#allocation2 + $0x28] sm:$0xff] %vm1634_vm2, %v1619_v29  ;;  %v1434_v8 = vadd.f32 %v1390_v55, %v1284_v61  ;;  %3228 = vmatmul.msk.f32.gmra.mxu1 %vm1634_vm2, %v4138_v35 }
 0x187   : > { %v1913_v62 = vld [vmem:[#allocation2 + $0x19] sm:$0xff]  ;;  %3244 = vmatmul.msk.f32.gmra.mxu2 %vm1634_vm2, %v1669_v38  ;;  %1659 = vst.msk [vmem:[#allocation2 + $0x28] sm:$0xff] %vm1634_vm2, %v4804_v1  ;;  %3276 = vmatmul.msk.f32.vlgmr.msrb.gmra.mxu0 %vm1634_vm2, %v1669_v38  ;;  %v1286_v38 = vadd.f32 %v4098_v7, %v1136_v15  ;;  %v1137_v7 = vadd.f32 %v4101_v11, %v3971_v23 }
 0x188   : > { %3260 = vmatmul.msk.f32.gmra.mxu3 %vm1634_vm2, %v1913_v62  ;;  %v1584_v57 = vadd.f32 %v1540_v24, %v1434_v8  ;;  %v1543_v39 = vpop.f32.mrf.mxu0 }
 0x18a   : > { %v1604_v42 = vadd.f32 %v4121_v32, %v1584_v57 }
 0x18c   : > { %v1620_v27 = vmax.f32 %v1604_v42, 0.0 }
 0x18d   : > { %v1393_v48 = vpop.f32.mrf.mxu3 }
 0x18e   : > { %1637 = vst.msk [vmem:[#allocation2 + $0x30] sm:$0xff] %vm1634_vm2, %v1620_v27  ;;  %v1435_v41 = vadd.f32 %v1393_v48, %v1285_v51  ;;  %v4157_v61 = vld [vmem:[#allocation2 + $0x28] sm:$0xff]  ;;  %v4194_v48 = vpop.f32.mrf.mxu1 }
 0x18f   : > { %v1670_v62 = vld [vmem:[#allocation2 + $0x27] sm:$0xff]  ;;  %3229 = vmatmul.msk.f32.gmra.mxu1 %vm1634_vm2, %v4157_v61 }
 0x190   : > { %v4159_v29 = vld [vmem:[#allocation2 + $0x21] sm:$0xff]  ;;  %3245 = vmatmul.msk.f32.gmra.mxu2 %vm1634_vm2, %v1670_v62  ;;  %v1585_v26 = vadd.f32 %v1543_v39, %v1435_v41  ;;  %3277 = vmatmul.msk.f32.gmra.mxu0 %vm1634_vm2, %v1670_v62  ;;  %v1546_v24 = vpop.f32.mrf.mxu0  ;;  %v4188_v39 = vpop.f32.mrf.mxu2  ;;  %v1287_v62 = vadd.f32 %v4112_v49, %v1137_v7  ;;  %v1138_v49 = vadd.f32 %v4114_v31, %v3982_v20 }
 0x191   : > { %3261 = vmatmul.msk.f32.gmra.mxu3 %vm1634_vm2, %v4159_v29 }
 0x192   : > { %v1605_v55 = vadd.f32 %v4121_v32, %v1585_v26 }
 0x194   : > { %v1621_v8 = vmax.f32 %v1605_v55, 0.0 }
 0x195   : > { %v1396_v54 = vpop.f32.mrf.mxu3  ;;  %v4173_v57 = vld [vmem:[#allocation2 + $0x30] sm:$0xff] }
 0x196   : > { %v4175_v42 = vld [vmem:[#allocation2 + $0x2f] sm:$0xff]  ;;  %1638 = vst.msk [vmem:[#allocation2 + $0x38] sm:$0xff] %vm1634_vm2, %v1621_v8  ;;  %v1436_v30 = vadd.f32 %v1396_v54, %v1286_v38  ;;  %v525_v54 = vadd.f32 %v3951_v36, %v3865_v60  ;;  %v1139_v36 = vadd.f32 %v4129_v4, %v3992_v46 }
 0x197   : > { %v4177_v10 = vld [vmem:[#allocation2 + $0x29] sm:$0xff]  ;;  %1660 = vst.msk [vmem:[#allocation2 + $0x38] sm:$0xff] %vm1634_vm2, %v4804_v1  ;;  %3230 = vmatmul.msk.f32.gmra.mxu1 %vm1634_vm2, %v4173_v57 }
 0x198   : > { %3246 = vmatmul.msk.f32.gmra.mxu2 %vm1634_vm2, %v4175_v42  ;;  %v1586_v51 = vadd.f32 %v1546_v24, %v1436_v30  ;;  %3278 = vmatmul.msk.f32.gmra.mxu0 %vm1634_vm2, %v4175_v42  ;;  %v1549_v27 = vpop.f32.mrf.mxu0  ;;  %v4217_v30 = vpop.f32.mrf.mxu2 }
 0x199   : > { %3262 = vmatmul.msk.f32.gmra.mxu3 %vm1634_vm2, %v4177_v10 }
 0x19a   : > { %v1606_v41 = vadd.f32 %v4121_v32, %v1586_v51  ;;  %v1288_v51 = vadd.f32 %v4125_v18, %v1138_v49  ;;  %v528_v49 = vadd.f32 %v3964_v52, %v3879_v5 }
 0x19c   : > { %v1622_v15 = vmax.f32 %v1606_v41, 0.0  ;;  %v4221_v41 = vpop.f32.mrf.mxu1 }
 0x19d   : > { %v1399_v26 = vpop.f32.mrf.mxu3 }
 0x19e   : > { %1639 = vst.msk [vmem:[#allocation2 + $0x40] sm:$0xff] %vm1634_vm2, %v1622_v15  ;;  %v1437_v23 = vadd.f32 %v1399_v26, %v1287_v62  ;;  %v4199_v11 = vld [vmem:[#allocation2 + $0x38] sm:$0xff]  ;;  %v690_v26 = vadd.f32 %v3960_v14, %v525_v54  ;;  %v1289_v54 = vadd.f32 %v4136_v53, %v1139_v36 }
 0x19f   : > { %v4201_v24 = vld [vmem:[#allocation2 + $0x37] sm:$0xff]  ;;  %3231 = vmatmul.msk.f32.gmra.mxu1 %vm1634_vm2, %v4199_v11 }
 0x1a0   : > { %v4203_v55 = vld [vmem:[#allocation2 + $0x31] sm:$0xff]  ;;  %3247 = vmatmul.msk.f32.gmra.mxu2 %vm1634_vm2, %v4201_v24  ;;  %v1587_v38 = vadd.f32 %v1549_v27, %v1437_v23  ;;  %3279 = vmatmul.msk.f32.gmra.mxu0 %vm1634_vm2, %v4201_v24  ;;  %v1552_v8 = vpop.f32.mrf.mxu0  ;;  %v840_v18 = vadd.f32 %v4000_v45, %v690_v26  ;;  %v4249_v46 = vpop.f32.mrf.mxu2 }
 0x1a1   : > { %3263 = vmatmul.msk.f32.gmra.mxu3 %vm1634_vm2, %v4203_v55 }
 0x1a2   : > { %v1607_v7 = vadd.f32 %v4121_v32, %v1587_v38 }
 0x1a4   : > { %v1623_v20 = vmax.f32 %v1607_v7, 0.0  ;;  %v990_v7 = vadd.f32 %v3994_v3, %v840_v18 }
 0x1a5   : > { %v1402_v31 = vpop.f32.mrf.mxu3  ;;  %v4223_v27 = vld [vmem:[#allocation2 + $0x40] sm:$0xff] }
 0x1a6   : > { %v4225_v62 = vld [vmem:[#allocation2 + $0x3f] sm:$0xff]  ;;  %1640 = vst.msk [vmem:[#allocation2 + $0x48] sm:$0xff] %vm1634_vm2, %v1623_v20  ;;  %v1438_v60 = vadd.f32 %v1402_v31, %v1288_v51  ;;  %v4252_v51 = vpop.f32.mrf.mxu1  ;;  %v1140_v3 = vadd.f32 %v4140_v47, %v990_v7 }
 0x1a7   : > { %v4227_v15 = vld [vmem:[#allocation2 + $0x39] sm:$0xff]  ;;  %1661 = vst.msk [vmem:[#allocation2 + $0x48] sm:$0xff] %vm1634_vm2, %v4804_v1  ;;  %3232 = vmatmul.msk.f32.gmra.mxu1 %vm1634_vm2, %v4223_v27 }
 0x1a8   : > { %3248 = vmatmul.msk.f32.gmra.mxu2 %vm1634_vm2, %v4225_v62  ;;  %v1588_v23 = vadd.f32 %v1552_v8, %v1438_v60  ;;  %3280 = vmatmul.msk.f32.gmra.mxu0 %vm1634_vm2, %v4225_v62  ;;  %v1555_v14 = vpop.f32.mrf.mxu0  ;;  %v691_v8 = vadd.f32 %v3973_v59, %v528_v49  ;;  %v531_v60 = vadd.f32 %v3979_v19, %v3898_v33  ;;  %v4283_v7 = vpop.f32.mrf.mxu2 }
 0x1a9   : > { %3264 = vmatmul.msk.f32.gmra.mxu3 %vm1634_vm2, %v4227_v15  ;;  %v1290_v18 = vadd.f32 %v4154_v16, %v1140_v3 }
 0x1aa   : > { %v1608_v38 = vadd.f32 %v4121_v32, %v1588_v23  ;;  %v841_v59 = vadd.f32 %v4012_v22, %v691_v8 }
 0x1ac   : > { %v1624_v45 = vmax.f32 %v1608_v38, 0.0  ;;  %v991_v23 = vadd.f32 %v4006_v17, %v841_v59 }
 0x1ad   : > { %v1405_v4 = vpop.f32.mrf.mxu3 }
 0x1ae   : > { %1641 = vst.msk [vmem:[#allocation2 + $0x50] sm:$0xff] %vm1634_vm2, %v1624_v45  ;;  %v1439_v20 = vadd.f32 %v1405_v4, %v1289_v54  ;;  %v4255_v31 = vld [vmem:[#allocation2 + $0x48] sm:$0xff]  ;;  %v692_v54 = vadd.f32 %v3988_v13, %v531_v60  ;;  %v1141_v19 = vadd.f32 %v4166_v43, %v991_v23  ;;  %v4294_v16 = vpop.f32.mrf.mxu1  ;;  %v534_v4 = vadd.f32 %v3990_v58, %v3910_v9 }
 0x1af   : > { %v4257_v5 = vld [vmem:[#allocation2 + $0x47] sm:$0xff]  ;;  %3233 = vmatmul.msk.f32.gmra.mxu1 %vm1634_vm2, %v4255_v31 }
 0x1b0   : > { %v4259_v52 = vld [vmem:[#allocation2 + $0x41] sm:$0xff]  ;;  %3249 = vmatmul.msk.f32.gmra.mxu2 %vm1634_vm2, %v4257_v5  ;;  %v1589_v53 = vadd.f32 %v1555_v14, %v1439_v20  ;;  %3281 = vmatmul.msk.f32.gmra.mxu0 %vm1634_vm2, %v4257_v5  ;;  %v1558_v26 = vpop.f32.mrf.mxu0  ;;  %v842_v17 = vadd.f32 %v4024_v25, %v692_v54  ;;  %v1291_v20 = vadd.f32 %v4188_v39, %v1141_v19 }
 0x1b1   : > { %3265 = vmatmul.msk.f32.gmra.mxu3 %vm1634_vm2, %v4259_v52  ;;  %v693_v59 = vadd.f32 %v4002_v44, %v534_v4  ;;  %v4319_v44 = vpop.f32.mrf.mxu2 }
 0x1b2   : > { %v1609_v36 = vadd.f32 %v4121_v32, %v1589_v53  ;;  %v992_v43 = vadd.f32 %v4018_v50, %v842_v17 }
 0x1b3   : > { %v843_v58 = vadd.f32 %v4036_v0, %v693_v59 }
 0x1b4   : > { %v1625_v47 = vmax.f32 %v1609_v36, 0.0  ;;  %v1142_v9 = vadd.f32 %v4194_v48, %v992_v43 }
 0x1b5   : > { %v1408_v49 = vpop.f32.mrf.mxu3  ;;  %v4276_v22 = vld [vmem:[#allocation2 + $0x50] sm:$0xff]  ;;  %v993_v48 = vadd.f32 %v4028_v21, %v843_v58 }
 0x1b6   : > { %v4278_v14 = vld [vmem:[#allocation2 + $0x4f] sm:$0xff]  ;;  %1642 = vst.msk [vmem:[#allocation2 + $0x58] sm:$0xff] %vm1634_vm2, %v1625_v47  ;;  %v1440_v33 = vadd.f32 %v1408_v49, %v1290_v18  ;;  %v4325_v18 = vpop.f32.mrf.mxu1  ;;  %v1292_v47 = vadd.f32 %v4217_v30, %v1142_v9  ;;  %v844_v30 = vadd.f32 %v4061_v12, %v3876_v40 }
 0x1b7   : > { %v4280_v38 = vld [vmem:[#allocation2 + $0x49] sm:$0xff]  ;;  %1662 = vst.msk [vmem:[#allocation2 + $0x58] sm:$0xff] %vm1634_vm2, %v4804_v1  ;;  %3234 = vmatmul.msk.f32.gmra.mxu1 %vm1634_vm2, %v4276_v22  ;;  %v1143_v21 = vadd.f32 %v4221_v41, %v993_v48 }
 0x1b8   : > { %3250 = vmatmul.msk.f32.gmra.mxu2 %vm1634_vm2, %v4278_v14  ;;  %v1590_v13 = vadd.f32 %v1558_v26, %v1440_v33  ;;  %3282 = vmatmul.msk.f32.gmra.mxu0 %vm1634_vm2, %v4278_v14  ;;  %v1561_v45 = vpop.f32.mrf.mxu0  ;;  %v994_v43 = vadd.f32 %v4040_v37, %v844_v30 }
 0x1b9   : > { %3266 = vmatmul.msk.f32.gmra.mxu3 %vm1634_vm2, %v4280_v38  ;;  %v4350_v4 = vpop.f32.mrf.mxu2 }
 0x1ba   : > { %v1610_v8 = vadd.f32 %v4121_v32, %v1590_v13  ;;  %v1144_v37 = vadd.f32 %v4252_v51, %v994_v43 }
 0x1bc   : > { %v1626_v25 = vmax.f32 %v1610_v8, 0.0 }
 0x1bd   : > { %v1411_v3 = vpop.f32.mrf.mxu3 }
 0x1be   : > { %1643 = vst.msk [vmem:[#allocation2 + $0x60] sm:$0xff] %vm1634_vm2, %v1626_v25  ;;  %v1441_v53 = vadd.f32 %v1411_v3, %v1291_v20  ;;  %v4307_v26 = vld [vmem:[#allocation2 + $0x58] sm:$0xff]  ;;  %v1293_v20 = vadd.f32 %v4249_v46, %v1143_v21  ;;  %v4355_v41 = vpop.f32.mrf.mxu1  ;;  %v845_v46 = vadd.f32 %v4075_v63, %v3894_v28  ;;  %v846_v21 = vadd.f32 %v4096_v34, %v3906_v6 }
 0x1bf   : > { %v4309_v60 = vld [vmem:[#allocation2 + $0x57] sm:$0xff]  ;;  %3235 = vmatmul.msk.f32.gmra.mxu1 %vm1634_vm2, %v4307_v26 }
 0x1c0   : > { %v4311_v36 = vld [vmem:[#allocation2 + $0x51] sm:$0xff]  ;;  %3251 = vmatmul.msk.f32.gmra.mxu2 %vm1634_vm2, %v4309_v60  ;;  %v1591_v50 = vadd.f32 %v1561_v45, %v1441_v53  ;;  %3283 = vmatmul.msk.f32.gmra.mxu0 %vm1634_vm2, %v4309_v60  ;;  %v1564_v39 = vpop.f32.mrf.mxu0 }
 0x1c1   : > { %3267 = vmatmul.msk.f32.gmra.mxu3 %vm1634_vm2, %v4311_v36 }
 0x1c2   : > { %v1611_v23 = vadd.f32 %v4121_v32, %v1591_v50 }
 0x1c4   : > { %v1627_v49 = vmax.f32 %v1611_v23, 0.0  ;;  %v995_v23 = vadd.f32 %v4066_v56, %v845_v46  ;;  %v3326_v56 = vld [vmem:[%s4794_s3 + $0x30] sm:$0xff] }
 0x1c5   : > { %v1414_v0 = vpop.f32.mrf.mxu3  ;;  %v4330_v54 = vld [vmem:[#allocation2 + $0x60] sm:$0xff]  ;;  %2517 = vmatpush.msra.mxu3 %v3326_v56  ;;  %v4807_v56 = vld [vmem:[#allocation4_spill] sm:$0xff] }
 0x1c6   : > { %v4332_v33 = vld [vmem:[#allocation2 + $0x5f] sm:$0xff]  ;;  %1644 = vst.msk [vmem:[#allocation2 + $0x68] sm:$0xff] %vm1634_vm2, %v1627_v49  ;;  %v1442_v17 = vadd.f32 %v1414_v0, %v1292_v47  ;;  %v4378_v47 = vpop.f32.mrf.mxu2 }
 0x1c7   : > { %v4334_v19 = vld [vmem:[#allocation2 + $0x59] sm:$0xff]  ;;  %1663 = vst.msk [vmem:[#allocation2 + $0x68] sm:$0xff] %vm1634_vm2, %v4804_v1  ;;  %3236 = vmatmul.msk.f32.gmra.mxu1 %vm1634_vm2, %v4330_v54 }
 0x1c8   : > { %3252 = vmatmul.msk.f32.gmra.mxu2 %vm1634_vm2, %v4332_v33  ;;  %v1592_v13 = vadd.f32 %v1564_v39, %v1442_v17  ;;  %3284 = vmatmul.msk.f32.gmra.mxu0 %vm1634_vm2, %v4332_v33  ;;  %v1567_v45 = vpop.f32.mrf.mxu0  ;;  %v1294_v39 = vadd.f32 %v4283_v7, %v1144_v37  ;;  %v1145_v7 = vadd.f32 %v4294_v16, %v995_v23  ;;  %v3360_v16 = vld [vmem:[%s4794_s3 + $0x40] sm:$0xff] }
 0x1c9   : > { %3268 = vmatmul.msk.f32.gmra.mxu3 %vm1634_vm2, %v4334_v19  ;;  %v4380_v48 = vpop.f32.mrf.mxu1  ;;  %2779 = vmatpush.msra.mxu1 %v3360_v16 }
 0x1ca   : > { %v1612_v8 = vadd.f32 %v4121_v32, %v1592_v13  ;;  %v2857_v13 = vld [vmem:[%s4796_s5] sm:$0xf] }
 0x1cb   : > { %3377 = vmatpush.msk.msra.mxu2 %vm363_vm0, %v2857_v13 }
 0x1cc   : > { %v1628_v25 = vmax.f32 %v1612_v8, 0.0  ;;  %v1295_v8 = vadd.f32 %v4319_v44, %v1145_v7  ;;  %v4805_v44 = vld [vmem:[#allocation3_spill] sm:$0xff] }
 0x1cd   : > { %v1417_v40 = vpop.f32.mrf.mxu3 }
 0x1ce   : > { %1645 = vst.msk [vmem:[#allocation2 + $0x70] sm:$0xff] %vm1634_vm2, %v1628_v25  ;;  %v1443_v12 = vadd.f32 %v1417_v40, %v1293_v20  ;;  %v4358_v3 = vld [vmem:[#allocation2 + $0x68] sm:$0xff]  ;;  %v996_v20 = vadd.f32 %v4089_v2, %v846_v21 }
 0x1cf   : > { %v4360_v59 = vld [vmem:[#allocation2 + $0x67] sm:$0xff]  ;;  %3237 = vmatmul.msk.f32.gmra.mxu1 %vm1634_vm2, %v4358_v3 }
 0x1d0   : > { %v4362_v53 = vld [vmem:[#allocation2 + $0x61] sm:$0xff]  ;;  %3253 = vmatmul.msk.f32.gmra.mxu2 %vm1634_vm2, %v4360_v59  ;;  %v1593_v9 = vadd.f32 %v1567_v45, %v1443_v12  ;;  %3285 = vmatmul.msk.f32.gmra.mxu0 %vm1634_vm2, %v4360_v59  ;;  %v1570_v58 = vpop.f32.mrf.mxu0  ;;  %v3343_v45 = vld [vmem:[%s4794_s3 + $0x38] sm:$0xff]  ;;  %v1146_v2 = vadd.f32 %v4325_v18, %v996_v20 }
 0x1d1   : > { %3269 = vmatmul.msk.f32.gmra.mxu3 %vm1634_vm2, %v4362_v53  ;;  %2648 = vmatpush.msra.mxu0 %v3343_v45 }
 0x1d2   : > { %v1613_v50 = vadd.f32 %v4121_v32, %v1593_v9 }
 0x1d4   : > { %v1629_v51 = vmax.f32 %v1613_v50, 0.0  ;;  %v4806_v50 = vld [vmem:[#allocation5_spill] sm:$0xff] }
 0x1d5   : > { %v1420_v28 = vpop.f32.mrf.mxu3  ;;  %v4382_v63 = vld [vmem:[#allocation2 + $0x70] sm:$0xff] }
 0x1d6   : > { %v4384_v49 = vld [vmem:[#allocation2 + $0x6f] sm:$0xff]  ;;  %1646 = vst.msk [vmem:[#allocation2 + $0x78] sm:$0xff] %vm1634_vm2, %v1629_v51  ;;  %v1444_v17 = vadd.f32 %v1420_v28, %v1294_v39  ;;  %v847_v39 = vadd.f32 %v4806_v50, %v4805_v44 }
 0x1d7   : > { %v4386_v0 = vld [vmem:[#allocation2 + $0x69] sm:$0xff]  ;;  %1664 = vst.msk [vmem:[#allocation2 + $0x78] sm:$0xff] %vm1634_vm2, %v4804_v1  ;;  %3238 = vmatmul.msk.f32.gmra.mxu1 %vm1634_vm2, %v4382_v63  ;;  %v4418_v25 = vpop.f32.mrf.mxu2 }
 0x1d8   : > { %3254 = vmatmul.msk.f32.gmra.mxu2 %vm1634_vm2, %v4384_v49  ;;  %v1594_v30 = vadd.f32 %v1570_v58, %v1444_v17  ;;  %3286 = vmatmul.msk.f32.gmra.mxu0 %vm1634_vm2, %v4384_v49  ;;  %v1573_v6 = vpop.f32.mrf.mxu0  ;;  %v1770_v58 = vpop.f32.mrf.mxu1  ;;  %v1296_v17 = vadd.f32 %v4350_v4, %v1146_v2  ;;  %v997_v7 = vadd.f32 %v4807_v56, %v847_v39 }
 0x1d9   : > { %3270 = vmatmul.msk.f32.gmra.mxu3 %vm1634_vm2, %v4386_v0 }
 0x1da   : > { %v1614_v34 = vadd.f32 %v4121_v32, %v1594_v30  ;;  %v1147_v4 = vadd.f32 %v4355_v41, %v997_v7 }
 0x1dc   : > { %v1630_v43 = vmax.f32 %v1614_v34, 0.0  ;;  %v1297_v20 = vadd.f32 %v4378_v47, %v1147_v4 }
 0x1dd   : > { %v1423_v40 = vpop.f32.mrf.mxu3 }
 0x1de   : > { %1647 = vst.msk [vmem:[#allocation2 + $0x80] sm:$0xff] %vm1634_vm2, %v1630_v43  ;;  %v1445_v12 = vadd.f32 %v1423_v40, %v1295_v8  ;;  %v4421_v37 = vld [vmem:[#allocation2 + $0x78] sm:$0xff] }
 0x1df   : > { %v4423_v46 = vld [vmem:[#allocation2 + $0x77] sm:$0xff]  ;;  %3239 = vmatmul.msk.f32.gmra.mxu1 %vm1634_vm2, %v4421_v37 }
 0x1e0   : > { %v4425_v9 = vld [vmem:[#allocation2 + $0x71] sm:$0xff]  ;;  %3255 = vmatmul.msk.f32.gmra.mxu2 %vm1634_vm2, %v4423_v46  ;;  %v1595_v23 = vadd.f32 %v1573_v6, %v1445_v12  ;;  %3287 = vmatmul.msk.f32.gmra.mxu0 %vm1634_vm2, %v4423_v46  ;;  %v1576_v28 = vpop.f32.mrf.mxu0  ;;  %v1875_v30 = vpop.f32.mrf.mxu2 }
 0x1e1   : > { %3271 = vmatmul.msk.f32.gmra.mxu3 %vm1634_vm2, %v4425_v9 }
 0x1e2   : > { %v1615_v51 = vadd.f32 %v4121_v32, %v1595_v23 }
 0x1e4   : > { %v1631_v21 = vmax.f32 %v1615_v51, 0.0 }
 0x1e5   : > { %v1426_v18 = vpop.f32.mrf.mxu3  ;;  %v4441_v13 = vld [vmem:[#allocation2 + $0x80] sm:$0xff] }
 0x1e6   : > { %v4443_v45 = vld [vmem:[#allocation2 + $0x7f] sm:$0xff]  ;;  %1648 = vst.msk [vmem:[#allocation2 + $0x88] sm:$0xff] %vm1634_vm2, %v1631_v21  ;;  %v1446_v6 = vadd.f32 %v1426_v18, %v1296_v17 }
 0x1e7   : > { %v4445_v16 = vld [vmem:[#allocation2 + $0x79] sm:$0xff]  ;;  %1665 = vst.msk [vmem:[#allocation2 + $0x88] sm:$0xff] %vm1634_vm2, %v4804_v1  ;;  %3240 = vmatmul.msk.f32.gmra.mxu1 %vm1634_vm2, %v4441_v13 }
 0x1e8   : > { %3256 = vmatmul.msk.f32.gmra.mxu2 %vm1634_vm2, %v4443_v45  ;;  %v1596_v34 = vadd.f32 %v1576_v28, %v1446_v6  ;;  %3288 = vmatmul.msk.f32.gmra.mxu0 %vm1634_vm2, %v4443_v45  ;;  %v1579_v12 = vpop.f32.mrf.mxu0 }
 0x1e9   : > { %3272 = vmatmul.msk.f32.gmra.mxu3 %vm1634_vm2, %v4445_v16 }
 0x1ea   : > { %v1616_v8 = vadd.f32 %v4121_v32, %v1596_v34 }
 0x1ec   : > { %v1632_v43 = vmax.f32 %v1616_v8, 0.0 }
 0x1ed   : > { %v1429_v40 = vpop.f32.mrf.mxu3 }
 0x1ee   : > { %1649 = vst.msk [vmem:[#allocation2 + $0x90] sm:$0xff] %vm1634_vm2, %v1632_v43  ;;  %v1447_v58 = vadd.f32 %v1429_v40, %v1297_v20  ;;  %v4462_v2 = vld [vmem:[#allocation2 + $0x88] sm:$0xff] }
 0x1ef   : > { %v4464_v41 = vld [vmem:[#allocation2 + $0x87] sm:$0xff]  ;;  %3241 = vmatmul.msk.f32.gmra.mxu1 %vm1634_vm2, %v4462_v2 }
 0x1f0   : > { %v4466_v44 = vld [vmem:[#allocation2 + $0x81] sm:$0xff]  ;;  %3257 = vmatmul.msk.f32.gmra.mxu2 %vm1634_vm2, %v4464_v41  ;;  %v1597_v50 = vadd.f32 %v1579_v12, %v1447_v58  ;;  %3289 = vmatmul.msk.f32.gmra.mxu0 %vm1634_vm2, %v4464_v41 }
 0x1f1   : > { %3273 = vmatmul.msk.f32.gmra.mxu3 %vm1634_vm2, %v4466_v44 }
 0x1f2   : > { %v1617_v47 = vadd.f32 %v4121_v32, %v1597_v50 }
 0x1f4   : > { %v1633_v39 = vmax.f32 %v1617_v47, 0.0 }
 0x1f5   : > { %v4477_v23 = vld [vmem:[#allocation2 + $0x89] sm:$0xff] }
 0x1f6   : > { %v4479_v51 = vld [vmem:[#allocation2 + $0x8f] sm:$0xff]  ;;  %1650 = vst.msk [vmem:[#allocation2 + $0x98] sm:$0xff] %vm1634_vm2, %v1633_v39 }
 0x1f7   : > { %1666 = vst.msk [vmem:[#allocation2 + $0x98] sm:$0xff] %vm1634_vm2, %v4804_v1  ;;  %3293 = vmatmul.msk.f32.vlgmr.msrb.gmra.mxu1 %vm1634_vm2, %v4138_v35  ;;  %v4502_v35 = vpop.f32.mrf.mxu3 }
 0x1f8   : > { %3310 = vmatmul.msk.f32.vlgmr.msrb.gmra.mxu2 %vm1634_vm2, %v4159_v29  ;;  %3290 = vmatmul.msk.f32.gmra.mxu0 %vm1634_vm2, %v4479_v51 }
 0x1f9   : > { %3274 = vmatmul.msk.f32.gmra.mxu3 %vm1634_vm2, %v4477_v23 }
 0x1fe   : > { %v4492_v32 = vld [vmem:[#allocation2 + $0x97] sm:$0xff] }
 0x1ff   : > { %3294 = vmatmul.msk.f32.gmra.mxu1 %vm1634_vm2, %v4157_v61 }
 0x200   : > { %3311 = vmatmul.msk.f32.gmra.mxu2 %vm1634_vm2, %v4177_v10  ;;  %3291 = vmatmul.msk.f32.gmra.mxu0 %vm1634_vm2, %v4492_v32 }
 0x201   : > { %3327 = vmatmul.msk.f32.vlgmr.msra.gmra.mxu3 %vm1634_vm2, %v4175_v42 }
 0x203   : > { %v1772_v1 = vpop.f32.mrf.mxu1 }
 0x204   : > { %v4504_v29 = vpop.f32.mrf.mxu0 }
 0x207   : > { %3295 = vmatmul.msk.f32.gmra.mxu1 %vm1634_vm2, %v4173_v57 }
 0x208   : > { %3312 = vmatmul.msk.f32.gmra.mxu2 %vm1634_vm2, %v4203_v55  ;;  %3344 = vmatmul.msk.f32.vlgmr.msra.gmra.mxu0 %vm1634_vm2, %v4173_v57 }
 0x209   : > { %3328 = vmatmul.msk.f32.gmra.mxu3 %vm1634_vm2, %v4201_v24 }
 0x20a   : > { %v1877_v61 = vpop.f32.mrf.mxu2 }
 0x20b   : > { %v1878_v10 = vadd.f32 %v1877_v61, %v1772_v1  ;;  %v1998_v42 = vpop.f32.mrf.mxu3 }
 0x20c   : > { %v1775_v28 = vpop.f32.mrf.mxu1 }
 0x20d   : > { %v2129_v17 = vpop.f32.mrf.mxu0 }
 0x20f   : > { %3296 = vmatmul.msk.f32.gmra.mxu1 %vm1634_vm2, %v4199_v11 }
 0x210   : > { %3313 = vmatmul.msk.f32.gmra.mxu2 %vm1634_vm2, %v4227_v15  ;;  %3345 = vmatmul.msk.f32.gmra.mxu0 %vm1634_vm2, %v4199_v11 }
 0x211   : > { %3329 = vmatmul.msk.f32.gmra.mxu3 %vm1634_vm2, %v4225_v62 }
 0x213   : > { %v1880_v24 = vpop.f32.mrf.mxu2 }
 0x214   : > { %v2000_v56 = vpop.f32.mrf.mxu3  ;;  %v1777_v7 = vpop.f32.mrf.mxu1 }
 0x215   : > { %v4522_v57 = vadd.f32 %v2000_v56, %v1878_v10  ;;  %v4524_v21 = vpop.f32.mrf.mxu0 }
 0x217   : > { %3297 = vmatmul.msk.f32.gmra.mxu1 %vm1634_vm2, %v4223_v27 }
 0x218   : > { %3314 = vmatmul.msk.f32.gmra.mxu2 %vm1634_vm2, %v4259_v52  ;;  %3346 = vmatmul.msk.f32.gmra.mxu0 %vm1634_vm2, %v4223_v27 }
 0x219   : > { %3330 = vmatmul.msk.f32.gmra.mxu3 %vm1634_vm2, %v4257_v5 }
 0x21b   : > { %v1882_v11 = vpop.f32.mrf.mxu2 }
 0x21c   : > { %v1883_v62 = vadd.f32 %v1882_v11, %v1777_v7  ;;  %v2003_v30 = vpop.f32.mrf.mxu3  ;;  %v1780_v18 = vpop.f32.mrf.mxu1 }
 0x21d   : > { %v2134_v6 = vpop.f32.mrf.mxu0 }
 0x21f   : > { %3298 = vmatmul.msk.f32.gmra.mxu1 %vm1634_vm2, %v4255_v31 }
 0x220   : > { %3315 = vmatmul.msk.f32.gmra.mxu2 %vm1634_vm2, %v4280_v38  ;;  %3347 = vmatmul.msk.f32.gmra.mxu0 %vm1634_vm2, %v4255_v31 }
 0x221   : > { %3331 = vmatmul.msk.f32.gmra.mxu3 %vm1634_vm2, %v4278_v14 }
 0x223   : > { %v1885_v5 = vpop.f32.mrf.mxu2 }
 0x224   : > { %v2005_v4 = vpop.f32.mrf.mxu3  ;;  %v1782_v34 = vpop.f32.mrf.mxu1 }
 0x225   : > { %v4542_v27 = vadd.f32 %v2005_v4, %v1883_v62  ;;  %v4544_v8 = vpop.f32.mrf.mxu0 }
 0x227   : > { %3299 = vmatmul.msk.f32.gmra.mxu1 %vm1634_vm2, %v4276_v22 }
 0x228   : > { %3316 = vmatmul.msk.f32.gmra.mxu2 %vm1634_vm2, %v4311_v36  ;;  %3348 = vmatmul.msk.f32.gmra.mxu0 %vm1634_vm2, %v4276_v22 }
 0x229   : > { %3332 = vmatmul.msk.f32.gmra.mxu3 %vm1634_vm2, %v4309_v60 }
 0x22b   : > { %v1887_v31 = vpop.f32.mrf.mxu2 }
 0x22c   : > { %v1888_v14 = vadd.f32 %v1887_v31, %v1782_v34  ;;  %v2008_v20 = vpop.f32.mrf.mxu3  ;;  %v1785_v43 = vpop.f32.mrf.mxu1 }
 0x22d   : > { %v2139_v40 = vpop.f32.mrf.mxu0  ;;  %v2188_v20 = vld [vmem:[#allocation2 + $0x90] sm:$0xff] }
 0x22e   : > { %v4620_v43 = vld [vmem:[#allocation2 + $0x91] sm:$0xff] }
 0x22f   : > { %3300 = vmatmul.msk.f32.gmra.mxu1 %vm1634_vm2, %v4307_v26 }
 0x230   : > { %3317 = vmatmul.msk.f32.gmra.mxu2 %vm1634_vm2, %v4334_v19  ;;  %3349 = vmatmul.msk.f32.gmra.mxu0 %vm1634_vm2, %v4307_v26 }
 0x231   : > { %3333 = vmatmul.msk.f32.gmra.mxu3 %vm1634_vm2, %v4332_v33 }
 0x233   : > { %v1890_v60 = vpop.f32.mrf.mxu2 }
 0x234   : > { %v2010_v12 = vpop.f32.mrf.mxu3  ;;  %v1787_v58 = vpop.f32.mrf.mxu1 }
 0x235   : > { %v4562_v22 = vadd.f32 %v2010_v12, %v1888_v14  ;;  %v4564_v50 = vpop.f32.mrf.mxu0  ;;  %v2189_v12 = vld [vmem:[#allocation2 + $0x98] sm:$0xff] }
 0x237   : > { %3301 = vmatmul.msk.f32.gmra.mxu1 %vm1634_vm2, %v4330_v54 }
 0x238   : > { %3318 = vmatmul.msk.f32.gmra.mxu2 %vm1634_vm2, %v4362_v53  ;;  %3350 = vmatmul.msk.f32.gmra.mxu0 %vm1634_vm2, %v4330_v54 }
 0x239   : > { %3334 = vmatmul.msk.f32.gmra.mxu3 %vm1634_vm2, %v4360_v59 }
 0x23b   : > { %v1892_v26 = vpop.f32.mrf.mxu2 }
 0x23c   : > { %v1893_v33 = vadd.f32 %v1892_v26, %v1787_v58  ;;  %v2013_v47 = vpop.f32.mrf.mxu3  ;;  %v1790_v39 = vpop.f32.mrf.mxu1  ;;  %v4628_v58 = vld [vmem:[#allocation2 + $0x99] sm:$0xff] }
 0x23d   : > { %v2144_v1 = vpop.f32.mrf.mxu0 }
 0x23f   : > { %3302 = vmatmul.msk.f32.gmra.mxu1 %vm1634_vm2, %v4358_v3 }
 0x240   : > { %3319 = vmatmul.msk.f32.gmra.mxu2 %vm1634_vm2, %v4386_v0  ;;  %3351 = vmatmul.msk.f32.gmra.mxu0 %vm1634_vm2, %v4358_v3 }
 0x241   : > { %3335 = vmatmul.msk.f32.gmra.mxu3 %vm1634_vm2, %v4384_v49 }
 0x243   : > { %v1895_v59 = vpop.f32.mrf.mxu2 }
 0x244   : > { %v2015_v61 = vpop.f32.mrf.mxu3  ;;  %v1792_v10 = vpop.f32.mrf.mxu1  ;;  %v2841_v59 = vld [vmem:[%s3501_s14 + $0x210] sm:$0xff] }
 0x245   : > { %v2039_v54 = vadd.f32 %v2015_v61, %v1893_v33  ;;  %v2146_v42 = vpop.f32.mrf.mxu0  ;;  %v2450_v33 = vld [vmem:[#allocation2 + $0x9f] sm:$0xff] }
 0x247   : > { %v4582_v28 = vadd.f32 %v2146_v42, %v2039_v54  ;;  %3303 = vmatmul.msk.f32.gmra.mxu1 %vm1634_vm2, %v4382_v63  ;;  %v2581_v54 = vld [vmem:[#allocation2 + $0xa0] sm:$0xff]  ;;  %v1873_v42 = vadd.f32 %v4418_v25, %v4380_v48 }
 0x248   : > { %3320 = vmatmul.msk.f32.gmra.mxu2 %vm1634_vm2, %v4425_v9  ;;  %3352 = vmatmul.msk.f32.gmra.mxu0 %vm1634_vm2, %v4382_v63 }
 0x249   : > { %3336 = vmatmul.msk.f32.gmra.mxu3 %vm1634_vm2, %v4423_v46 }
 0x24b   : > { %v1897_v3 = vpop.f32.mrf.mxu2 }
 0x24c   : > { %v1898_v49 = vadd.f32 %v1897_v3, %v1792_v10  ;;  %v2018_v17 = vpop.f32.mrf.mxu3  ;;  %v1795_v24 = vpop.f32.mrf.mxu1 }
 0x24d   : > { %v2149_v56 = vpop.f32.mrf.mxu0  ;;  %v2035_v17 = vadd.f32 %v4502_v35, %v1873_v42 }
 0x24e   : > { %v2842_v56 = vld [vmem:[%s3501_s14 + $0x218] sm:$0xff] }
 0x24f   : > { %3304 = vmatmul.msk.f32.gmra.mxu1 %vm1634_vm2, %v4421_v37 }
 0x250   : > { %3321 = vmatmul.msk.f32.gmra.mxu2 %vm1634_vm2, %v4445_v16  ;;  %3353 = vmatmul.msk.f32.gmra.mxu0 %vm1634_vm2, %v4421_v37 }
 0x251   : > { %3337 = vmatmul.msk.f32.gmra.mxu3 %vm1634_vm2, %v4443_v45 }
 0x253   : > { %v1900_v46 = vpop.f32.mrf.mxu2 }
 0x254   : > { %v2020_v7 = vpop.f32.mrf.mxu3  ;;  %v1797_v11 = vpop.f32.mrf.mxu1 }
 0x255   : > { %v2040_v63 = vadd.f32 %v2020_v7, %v1898_v49  ;;  %v2151_v62 = vpop.f32.mrf.mxu0  ;;  %v2166_v7 = vadd.f32 %v4504_v29, %v2035_v17  ;;  %v2848_v17 = vld [vmem:[%s3501_s14 + $0x248] sm:$0xff] }
 0x257   : > { %v4600_v30 = vadd.f32 %v2151_v62, %v2040_v63  ;;  %3305 = vmatmul.msk.f32.gmra.mxu1 %vm1634_vm2, %v4441_v13 }
 0x258   : > { %3322 = vmatmul.msk.f32.gmra.mxu2 %vm1634_vm2, %v4466_v44  ;;  %3354 = vmatmul.msk.f32.gmra.mxu0 %vm1634_vm2, %v4441_v13 }
 0x259   : > { %3338 = vmatmul.msk.f32.gmra.mxu3 %vm1634_vm2, %v4464_v41 }
 0x25b   : > { %v1902_v37 = vpop.f32.mrf.mxu2 }
 0x25c   : > { %v1903_v45 = vadd.f32 %v1902_v37, %v1797_v11  ;;  %v2023_v18 = vpop.f32.mrf.mxu3  ;;  %v1800_v6 = vpop.f32.mrf.mxu1  ;;  %v2843_v37 = vld [vmem:[%s3501_s14 + $0x220] sm:$0xff] }
 0x25d   : > { %v2154_v5 = vpop.f32.mrf.mxu0  ;;  %v2167_v18 = vadd.f32 %v4524_v21, %v4522_v57 }
 0x25f   : > { %3306 = vmatmul.msk.f32.gmra.mxu1 %vm1634_vm2, %v4462_v2 }
 0x260   : > { %3323 = vmatmul.msk.f32.gmra.mxu2 %vm1634_vm2, %v4477_v23  ;;  %3355 = vmatmul.msk.f32.gmra.mxu0 %vm1634_vm2, %v4462_v2 }
 0x261   : > { %3339 = vmatmul.msk.f32.gmra.mxu3 %vm1634_vm2, %v4479_v51 }
 0x263   : > { %v1905_v41 = vpop.f32.mrf.mxu2 }
 0x264   : > { %v2025_v4 = vpop.f32.mrf.mxu3  ;;  %v1802_v34 = vpop.f32.mrf.mxu1 }
 0x265   : > { %v2041_v13 = vadd.f32 %v2025_v4, %v1903_v45  ;;  %v2156_v31 = vpop.f32.mrf.mxu0  ;;  %v2844_v4 = vld [vmem:[%s3501_s14 + $0x228] sm:$0xff] }
 0x267   : > { %v4618_v14 = vadd.f32 %v2156_v31, %v2041_v13  ;;  %3307 = vmatmul.msk.f32.gmra.mxu1 %vm1634_vm2, %v2188_v20 }
 0x268   : > { %3324 = vmatmul.msk.f32.gmra.mxu2 %vm1634_vm2, %v4620_v43  ;;  %3356 = vmatmul.msk.f32.gmra.mxu0 %vm1634_vm2, %v2188_v20 }
 0x269   : > { %3340 = vmatmul.msk.f32.gmra.mxu3 %vm1634_vm2, %v4492_v32 }
 0x26b   : > { %v1907_v2 = vpop.f32.mrf.mxu2 }
 0x26c   : > { %v1908_v51 = vadd.f32 %v1907_v2, %v1802_v34  ;;  %v2028_v40 = vpop.f32.mrf.mxu3  ;;  %v1805_v60 = vpop.f32.mrf.mxu1 }
 0x26d   : > { %v2159_v26 = vpop.f32.mrf.mxu0 }
 0x26f   : > { %3308 = vmatmul.msk.f32.gmra.mxu1 %vm1634_vm2, %v2189_v12 }
 0x270   : > { %3325 = vmatmul.msk.f32.gmra.mxu2 %vm1634_vm2, %v4628_v58  ;;  %3357 = vmatmul.msk.f32.gmra.mxu0 %vm1634_vm2, %v2189_v12 }
 0x271   : > { %3341 = vmatmul.msk.f32.gmra.mxu3 %vm1634_vm2, %v2450_v33  ;;  %v2846_v33 = vld [vmem:[%s3501_s14 + $0x238] sm:$0xff] }
 0x273   : > { %v1910_v32 = vpop.f32.mrf.mxu2 }
 0x274   : > { %v2030_v47 = vpop.f32.mrf.mxu3  ;;  %v2257_v1 = vpop.f32.mrf.mxu1 }
 0x275   : > { %v2042_v39 = vadd.f32 %v2030_v47, %v1908_v51  ;;  %v2161_v61 = vpop.f32.mrf.mxu0  ;;  %v2168_v51 = vadd.f32 %v4544_v8, %v4542_v27 }
 0x277   : > { %v4636_v10 = vadd.f32 %v2161_v61, %v2042_v39  ;;  %3361 = vmatmul.msk.f32.vlgmr.msra.gmra.mxu1 %vm1634_vm2, %v4203_v55  ;;  %v2297_v55 = vadd.f32 %v2257_v1, %v2166_v7  ;;  %v2169_v61 = vadd.f32 %v4564_v50, %v4562_v22 }
 0x278   : > { %3378 = vmatmul.msk.f32.vlgmr.msra.gmra.mxu2 %vm314_vm1, %v2841_v59  ;;  %3358 = vmatmul.msk.f32.gmra.mxu0 %vm1634_vm2, %v2581_v54 }
 0x27b   : > { %v2388_v3 = vpop.f32.mrf.mxu2 }
 0x27c   : > { %v2033_v49 = vpop.f32.mrf.mxu3  ;;  %v2260_v24 = vpop.f32.mrf.mxu1  ;;  %v2428_v63 = vadd.f32 %v2388_v3, %v2297_v55 }
 0x27d   : > { %v2164_v46 = vpop.f32.mrf.mxu0 }
 0x27f   : > { %3362 = vmatmul.msk.f32.gmra.mxu1 %vm1634_vm2, %v4227_v15 }
 0x280   : > { %3379 = vmatmul.msk.f32.gmra.mxu2 %vm314_vm1, %v2842_v56 }
 0x283   : > { %v2391_v48 = vpop.f32.mrf.mxu2 }
 0x284   : > { %v2519_v25 = vpop.f32.mrf.mxu3  ;;  %v2262_v62 = vpop.f32.mrf.mxu1 }
 0x285   : > { %v2559_v11 = vadd.f32 %v2519_v25, %v2428_v63  ;;  %v2650_v45 = vpop.f32.mrf.mxu0  ;;  %v2298_v15 = vadd.f32 %v2262_v62, %v2167_v18  ;;  %v2850_v62 = vld [vmem:[%s3501_s14 + $0x258] sm:$0xff] }
 0x287   : > { %v4651_v35 = vadd.f32 %v2650_v45, %v2559_v11  ;;  %3363 = vmatmul.msk.f32.gmra.mxu1 %vm1634_vm2, %v4259_v52  ;;  %v2845_v52 = vld [vmem:[%s3501_s14 + $0x230] sm:$0xff] }
 0x288   : > { %3380 = vmatmul.msk.f32.gmra.mxu2 %vm314_vm1, %v2843_v37 }
 0x28b   : > { %v2393_v29 = vpop.f32.mrf.mxu2 }
 0x28c   : > { %v2429_v6 = vadd.f32 %v2393_v29, %v2298_v15  ;;  %v2522_v5 = vpop.f32.mrf.mxu3  ;;  %v2265_v41 = vpop.f32.mrf.mxu1  ;;  %v2851_v29 = vld [vmem:[%s3501_s14 + $0x260] sm:$0xff] }
 0x28d   : > { %v2653_v13 = vpop.f32.mrf.mxu0 }
 0x28f   : > { %3364 = vmatmul.msk.f32.gmra.mxu1 %vm1634_vm2, %v4280_v38 }
 0x290   : > { %3381 = vmatmul.msk.f32.gmra.mxu2 %vm314_vm1, %v2844_v4 }
 0x293   : > { %v2396_v57 = vpop.f32.mrf.mxu2 }
 0x294   : > { %v2524_v21 = vpop.f32.mrf.mxu3  ;;  %v2267_v31 = vpop.f32.mrf.mxu1  ;;  %v2852_v57 = vld [vmem:[%s3501_s14 + $0x268] sm:$0xff] }
 0x295   : > { %v2560_v34 = vadd.f32 %v2524_v21, %v2429_v6  ;;  %v2655_v20 = vpop.f32.mrf.mxu0  ;;  %v2299_v38 = vadd.f32 %v2267_v31, %v2168_v51 }
 0x297   : > { %v4663_v2 = vadd.f32 %v2655_v20, %v2560_v34  ;;  %3365 = vmatmul.msk.f32.gmra.mxu1 %vm1634_vm2, %v4311_v36  ;;  %v2847_v36 = vld [vmem:[%s3501_s14 + $0x240] sm:$0xff]  ;;  %v2853_v20 = vld [vmem:[%s3501_s14 + $0x270] sm:$0xff] }
 0x298   : > { %3382 = vmatmul.msk.f32.gmra.mxu2 %vm314_vm1, %v2845_v52  ;;  %v2451_v34 = vld [vmem:[#allocation2 + $0xa7] sm:$0xff] }
 0x299   : > { %3342 = vmatmul.msk.f32.gmra.mxu3 %vm1634_vm2, %v2451_v34 }
 0x29b   : > { %v2398_v40 = vpop.f32.mrf.mxu2 }
 0x29c   : > { %v2430_v60 = vadd.f32 %v2398_v40, %v2299_v38  ;;  %v2527_v12 = vpop.f32.mrf.mxu3  ;;  %v2270_v26 = vpop.f32.mrf.mxu1  ;;  %v2582_v40 = vld [vmem:[#allocation2 + $0xa8] sm:$0xff] }
 0x29d   : > { %v2658_v32 = vpop.f32.mrf.mxu0  ;;  %3359 = vmatmul.msk.f32.gmra.mxu0 %vm1634_vm2, %v2582_v40 }
 0x29e   : > { %v2854_v32 = vld [vmem:[%s3501_s14 + $0x278] sm:$0xff] }
 0x29f   : > { %3366 = vmatmul.msk.f32.gmra.mxu1 %vm1634_vm2, %v4334_v19 }
 0x2a0   : > { %3383 = vmatmul.msk.f32.gmra.mxu2 %vm314_vm1, %v2846_v33 }
 0x2a3   : > { %v2401_v27 = vpop.f32.mrf.mxu2 }
 0x2a4   : > { %v2529_v8 = vpop.f32.mrf.mxu3  ;;  %v2272_v39 = vpop.f32.mrf.mxu1 }
 0x2a5   : > { %v2561_v47 = vadd.f32 %v2529_v8, %v2430_v60  ;;  %v2660_v1 = vpop.f32.mrf.mxu0  ;;  %v2300_v19 = vadd.f32 %v2272_v39, %v2169_v61 }
 0x2a7   : > { %v4675_v59 = vadd.f32 %v2660_v1, %v2561_v47  ;;  %3367 = vmatmul.msk.f32.gmra.mxu1 %vm1634_vm2, %v4362_v53  ;;  %v2849_v53 = vld [vmem:[%s3501_s14 + $0x250] sm:$0xff] }
 0x2a8   : > { %3384 = vmatmul.msk.f32.gmra.mxu2 %vm314_vm1, %v2847_v36  ;;  %v2712_v36 = vld [vmem:[#allocation2 + $0xa1] sm:$0xff] }
 0x2ab   : > { %v2403_v54 = vpop.f32.mrf.mxu2 }
 0x2ac   : > { %v2431_v42 = vadd.f32 %v2403_v54, %v2300_v19  ;;  %v2532_v3 = vpop.f32.mrf.mxu3  ;;  %v2275_v49 = vpop.f32.mrf.mxu1 }
 0x2ad   : > { %v2663_v24 = vpop.f32.mrf.mxu0  ;;  %v2856_v49 = vld [vmem:[%s3501_s14 + $0x288] sm:$0xff] }
 0x2af   : > { %3368 = vmatmul.msk.f32.gmra.mxu1 %vm1634_vm2, %v4386_v0 }
 0x2b0   : > { %3385 = vmatmul.msk.f32.gmra.mxu2 %vm314_vm1, %v2848_v17  ;;  %v2713_v17 = vld [vmem:[#allocation2 + $0xa9] sm:$0xff] }
 0x2b3   : > { %v2406_v22 = vpop.f32.mrf.mxu2 }
 0x2b4   : > { %v2534_v50 = vpop.f32.mrf.mxu3  ;;  %v2277_v46 = vpop.f32.mrf.mxu1 }
 0x2b5   : > { %v2562_v56 = vadd.f32 %v2534_v50, %v2431_v42  ;;  %v2301_v7 = vadd.f32 %v2277_v46, %v4582_v28  ;;  %v2665_v55 = vpop.f32.mrf.mxu0  ;;  %v4741_v46 = vld [vmem:[%s4797_s6] ss:$0 sm:$0xff] }
 0x2b7   : > { %v4688_v63 = vadd.f32 %v2665_v55, %v2562_v56  ;;  %3369 = vmatmul.msk.f32.gmra.mxu1 %vm1634_vm2, %v4425_v9  ;;  %v4736_v56 = vld [vmem:[%s4795_s4] ss:$0 sm:$0xff] }
 0x2b8   : > { %3386 = vmatmul.msk.f32.gmra.mxu2 %vm314_vm1, %v2849_v53 }
 0x2bb   : > { %v2408_v0 = vpop.f32.mrf.mxu2 }
 0x2bc   : > { %v2432_v48 = vadd.f32 %v2408_v0, %v2301_v7  ;;  %v2537_v25 = vpop.f32.mrf.mxu3  ;;  %v2280_v11 = vpop.f32.mrf.mxu1 }
 0x2bd   : > { %v2668_v37 = vpop.f32.mrf.mxu0 }
 0x2bf   : > { %3370 = vmatmul.msk.f32.gmra.mxu1 %vm1634_vm2, %v4445_v16 }
 0x2c0   : > { %3387 = vmatmul.msk.f32.gmra.mxu2 %vm314_vm1, %v2850_v62 }
 0x2c3   : > { %v2411_v28 = vpop.f32.mrf.mxu2 }
 0x2c4   : > { %v2539_v45 = vpop.f32.mrf.mxu3  ;;  %v2282_v15 = vpop.f32.mrf.mxu1 }
 0x2c5   : > { %v2563_v18 = vadd.f32 %v2539_v45, %v2432_v48  ;;  %v2302_v9 = vadd.f32 %v2282_v15, %v4600_v30  ;;  %v2670_v6 = vpop.f32.mrf.mxu0 }
 0x2c7   : > { %v4699_v5 = vadd.f32 %v2670_v6, %v2563_v18  ;;  %3371 = vmatmul.msk.f32.gmra.mxu1 %vm1634_vm2, %v4466_v44 }
 0x2c8   : > { %3388 = vmatmul.msk.f32.gmra.mxu2 %vm314_vm1, %v2851_v29 }
 0x2cb   : > { %v2413_v16 = vpop.f32.mrf.mxu2 }
 0x2cc   : > { %v2433_v41 = vadd.f32 %v2413_v16, %v2302_v9  ;;  %v2542_v4 = vpop.f32.mrf.mxu3  ;;  %v2285_v13 = vpop.f32.mrf.mxu1 }
 0x2cd   : > { %v2673_v21 = vpop.f32.mrf.mxu0 }
 0x2cf   : > { %3372 = vmatmul.msk.f32.gmra.mxu1 %vm1634_vm2, %v4477_v23 }
 0x2d0   : > { %3389 = vmatmul.msk.f32.gmra.mxu2 %vm314_vm1, %v2852_v57 }
 0x2d3   : > { %v2416_v30 = vpop.f32.mrf.mxu2 }
 0x2d4   : > { %v2544_v44 = vpop.f32.mrf.mxu3  ;;  %v2287_v52 = vpop.f32.mrf.mxu1 }
 0x2d5   : > { %v2564_v31 = vadd.f32 %v2544_v44, %v2433_v41  ;;  %v2303_v51 = vadd.f32 %v2287_v52, %v4618_v14  ;;  %v2675_v38 = vpop.f32.mrf.mxu0 }
 0x2d7   : > { %v4711_v60 = vadd.f32 %v2675_v38, %v2564_v31  ;;  %3373 = vmatmul.msk.f32.gmra.mxu1 %vm1634_vm2, %v4620_v43  ;;  %v2855_v43 = vld [vmem:[%s3501_s14 + $0x280] sm:$0xff]  ;;  %s3403_s14 = sshll.u32 %s4809_s25, 6 }
 0x2d8   : > { %3390 = vmatmul.msk.f32.gmra.mxu2 %vm314_vm1, %v2853_v20  ;;  %s4749_s12 = scalar_lea.vmem %s4798_s7, %s3403_s14 }
 0x2db   : > { %v2418_v23 = vpop.f32.mrf.mxu2 }
 0x2dc   : > { %v2434_v12 = vadd.f32 %v2418_v23, %v2303_v51  ;;  %v2547_v26 = vpop.f32.mrf.mxu3  ;;  %v2290_v33 = vpop.f32.mrf.mxu1 }
 0x2dd   : > { %v2678_v27 = vpop.f32.mrf.mxu0 }
 0x2df   : > { %3374 = vmatmul.msk.f32.gmra.mxu1 %vm1634_vm2, %v4628_v58 }
 0x2e0   : > { %3391 = vmatmul.msk.f32.gmra.mxu2 %vm314_vm1, %v2854_v32 }
 0x2e3   : > { %v2421_v14 = vpop.f32.mrf.mxu2 }
 0x2e4   : > { %v2549_v8 = vpop.f32.mrf.mxu3  ;;  %v2292_v39 = vpop.f32.mrf.mxu1 }
 0x2e5   : > { %v2565_v47 = vadd.f32 %v2549_v8, %v2434_v12  ;;  %v2304_v1 = vadd.f32 %v2292_v39, %v4636_v10  ;;  %v2680_v61 = vpop.f32.mrf.mxu0 }
 0x2e7   : > { %v4723_v19 = vadd.f32 %v2680_v61, %v2565_v47  ;;  %3375 = vmatmul.msk.f32.gmra.mxu1 %vm1634_vm2, %v2712_v36 }
 0x2e8   : > { %3392 = vmatmul.msk.f32.gmra.mxu2 %vm314_vm1, %v2855_v43 }
 0x2eb   : > { %v2423_v54 = vpop.f32.mrf.mxu2 }
 0x2ec   : > { %v4727_v58 = vadd.f32 %v2423_v54, %v2304_v1  ;;  %v2552_v42 = vpop.f32.mrf.mxu3  ;;  %v2295_v3 = vpop.f32.mrf.mxu1 }
 0x2ed   : > { %v2683_v24 = vpop.f32.mrf.mxu0 }
 0x2ef   : > { %3376 = vmatmul.msk.f32.gmra.mxu1 %vm1634_vm2, %v2713_v17 }
 0x2f0   : > { %3393 = vmatmul.msk.f32.gmra.mxu2 %vm314_vm1, %v2856_v49 }
 0x2f3   : > { %v2426_v10 = vpop.f32.mrf.mxu2 }
 0x2f4   : > { %v2781_v22 = vpop.f32.mrf.mxu1  ;;  %v2554_v36 = vpop.f32.mrf.mxu3 }
 0x2f5   : > { %v2821_v50 = vadd.f32 %v2781_v22, %v4651_v35  ;;  %v2685_v1 = vpop.f32.mrf.mxu0 }
 0x2f7   : > { %v2833_v7 = vadd.f32 %v4736_v56, %v2821_v50 }
 0x2fb   : > { %v2930_v53 = vpop.f32.mrf.mxu2 }
 0x2fc   : > { %v2931_v55 = vadd.f32 %v4741_v46, %v2930_v53  ;;  %v2784_v0 = vpop.f32.mrf.mxu1 }
 0x2fe   : > { %v2970_v48 = vadd.f32 %v2931_v55, %v2833_v7 }
 0x300   : > { %v2978_v35 = vmax.f32 %v2970_v48, 0.0  ;;  %v2566_v48 = vadd.f32 %v2554_v36, %v4727_v58 }
 0x302   : > { %2986 = vst.msk [vmem:[%s4749_s12] sm:$0xff] %vm1634_vm2, %v2978_v35 }
 0x303   : > { %v2933_v25 = vpop.f32.mrf.mxu2 }
 0x304   : > { %v2786_v11 = vpop.f32.mrf.mxu1 }
 0x305   : > { %v2822_v62 = vadd.f32 %v2786_v11, %v4663_v2  ;;  %v2697_v11 = vadd.f32 %v2685_v1, %v2566_v48 }
 0x307   : > { %v2834_v28 = vadd.f32 %v4736_v56, %v2822_v62 }
 0x30b   : > { %v2935_v37 = vpop.f32.mrf.mxu2 }
 0x30c   : > { %v2936_v45 = vadd.f32 %v4741_v46, %v2935_v37  ;;  %v2789_v18 = vpop.f32.mrf.mxu1 }
 0x30e   : > { %v2971_v15 = vadd.f32 %v2936_v45, %v2834_v28 }
 0x310   : > { %v2979_v29 = vmax.f32 %v2971_v15, 0.0 }
 0x312   : > { %3394 = vst.msk [vmem:[%s4749_s12 + $0x8] sm:$0xff] %vm1634_vm2, %v2979_v29 }
 0x313   : > { %v2938_v9 = vpop.f32.mrf.mxu2 }
 0x314   : > { %v2791_v6 = vpop.f32.mrf.mxu1 }
 0x315   : > { %v2823_v16 = vadd.f32 %v2791_v6, %v4675_v59 }
 0x317   : > { %v2835_v4 = vadd.f32 %v4736_v56, %v2823_v16 }
 0x31a   : > { %v2688_v24 = vpop.f32.mrf.mxu0 }
 0x31b   : > { %v2940_v41 = vpop.f32.mrf.mxu2 }
 0x31c   : > { %v2941_v2 = vadd.f32 %v4741_v46, %v2940_v41  ;;  %v2794_v13 = vpop.f32.mrf.mxu1  ;;  %v2557_v49 = vpop.f32.mrf.mxu3 }
 0x31e   : > { %v2972_v57 = vadd.f32 %v2941_v2, %v2835_v4 }
 0x320   : > { %v2980_v21 = vmax.f32 %v2972_v57, 0.0 }
 0x322   : > { %3395 = vst.msk [vmem:[%s4749_s12 + $0x10] sm:$0xff] %vm1634_vm2, %v2980_v21 }
 0x323   : > { %v2943_v34 = vpop.f32.mrf.mxu2 }
 0x324   : > { %v2796_v30 = vpop.f32.mrf.mxu1 }
 0x325   : > { %v2824_v44 = vadd.f32 %v2796_v30, %v4688_v63 }
 0x327   : > { %v2836_v52 = vadd.f32 %v4736_v56, %v2824_v44 }
 0x32b   : > { %v2945_v31 = vpop.f32.mrf.mxu2 }
 0x32c   : > { %v2946_v59 = vadd.f32 %v4741_v46, %v2945_v31  ;;  %v2799_v20 = vpop.f32.mrf.mxu1 }
 0x32e   : > { %v2973_v51 = vadd.f32 %v2946_v59, %v2836_v52 }
 0x330   : > { %v2981_v38 = vmax.f32 %v2973_v51, 0.0 }
 0x332   : > { %3396 = vst.msk [vmem:[%s4749_s12 + $0x18] sm:$0xff] %vm1634_vm2, %v2981_v38 }
 0x333   : > { %v2948_v40 = vpop.f32.mrf.mxu2 }
 0x334   : > { %v2801_v23 = vpop.f32.mrf.mxu1 }
 0x335   : > { %v2825_v12 = vadd.f32 %v2801_v23, %v4699_v5 }
 0x337   : > { %v2837_v33 = vadd.f32 %v4736_v56, %v2825_v12 }
 0x33b   : > { %v2950_v26 = vpop.f32.mrf.mxu2 }
 0x33c   : > { %v2951_v63 = vadd.f32 %v4741_v46, %v2950_v26  ;;  %v2804_v32 = vpop.f32.mrf.mxu1 }
 0x33e   : > { %v2974_v27 = vadd.f32 %v2951_v63, %v2837_v33 }
 0x340   : > { %v2982_v14 = vmax.f32 %v2974_v27, 0.0 }
 0x342   : > { %3397 = vst.msk [vmem:[%s4749_s12 + $0x20] sm:$0xff] %vm1634_vm2, %v2982_v14 }
 0x343   : > { %v2953_v8 = vpop.f32.mrf.mxu2 }
 0x344   : > { %v2806_v47 = vpop.f32.mrf.mxu1 }
 0x345   : > { %v2826_v39 = vadd.f32 %v2806_v47, %v4711_v60 }
 0x347   : > { %v2838_v5 = vadd.f32 %v4736_v56, %v2826_v39 }
 0x34b   : > { %v2955_v43 = vpop.f32.mrf.mxu2 }
 0x34c   : > { %v2956_v61 = vadd.f32 %v4741_v46, %v2955_v43  ;;  %v2809_v54 = vpop.f32.mrf.mxu1 }
 0x34e   : > { %v2975_v42 = vadd.f32 %v2956_v61, %v2838_v5 }
 0x350   : > { %v2983_v3 = vmax.f32 %v2975_v42, 0.0 }
 0x352   : > { %3398 = vst.msk [vmem:[%s4749_s12 + $0x28] sm:$0xff] %vm1634_vm2, %v2983_v3 }
 0x353   : > { %v2958_v17 = vpop.f32.mrf.mxu2 }
 0x354   : > { %v2811_v10 = vpop.f32.mrf.mxu1 }
 0x355   : > { %v2827_v22 = vadd.f32 %v2811_v10, %v4723_v19 }
 0x357   : > { %v2839_v50 = vadd.f32 %v4736_v56, %v2827_v22 }
 0x35b   : > { %v2960_v60 = vpop.f32.mrf.mxu2 }
 0x35c   : > { %v2961_v53 = vadd.f32 %v4741_v46, %v2960_v60  ;;  %v2814_v7 = vpop.f32.mrf.mxu1 }
 0x35e   : > { %v2976_v55 = vadd.f32 %v2961_v53, %v2839_v50 }
 0x360   : > { %v2984_v0 = vmax.f32 %v2976_v55, 0.0 }
 0x362   : > { %3399 = vst.msk [vmem:[%s4749_s12 + $0x30] sm:$0xff] %vm1634_vm2, %v2984_v0 }
 0x363   : > { %v2963_v35 = vpop.f32.mrf.mxu2 }
 0x364   : > { %v2816_v25 = vpop.f32.mrf.mxu1 }
 0x365   : > { %v2828_v62 = vadd.f32 %v2816_v25, %v2697_v11 }
 0x367   : > { %v2840_v19 = vadd.f32 %v4736_v56, %v2828_v62 }
 0x36b   : > { %v2965_v37 = vpop.f32.mrf.mxu2 }
 0x36c   : > { %v2966_v28 = vadd.f32 %v4741_v46, %v2965_v37  ;;  %v2819_v45 = vpop.f32.mrf.mxu1 }
 0x36e   : > { %v2977_v18 = vadd.f32 %v2966_v28, %v2840_v19 }
 0x370   : > { %v2985_v15 = vmax.f32 %v2977_v18, 0.0 }
 0x372   : > { %3400 = vst.msk [vmem:[%s4749_s12 + $0x38] sm:$0xff] %vm1634_vm2, %v2985_v15 }
 0x373   : > { %v2968_v29 = vpop.f32.mrf.mxu2 }
 0x374 PF: > { %s17_s24 = sadd.s32 1, %s3426_s24  }
 0x375   : > { %p14_p4 = scmp.ge.s32.totalorder %s17_s24, 4  }
 0x377   :  { %16 = sbr.rel (!%p14_p4) target bundleno = 1 (0x1), region = 101 }

</bundles_post_ra>
